<compile_context>
chip_gen: v7x
topology: tpu7x:2x2x1
jax: 0.10.0
libtpu: 0.0.40
codegen_flags: <defaults>
</compile_context>

<pallas_src>
import functools

import jax
import jax.numpy as jnp
import numpy as np
from jax import lax
from jax.experimental import pallas as pl
from jax.experimental.pallas import tpu as pltpu


def _physics_attention_kernel(
    x_ref, wfx_ref, bfx_ref, wx_ref, bx_ref, wsl_ref, bsl_ref,
    wqkv_ref, wout_ref, bout_ref, out_ref,
    st_acc, norm_acc, osp_acc,
    *, heads, dim_head, slice_num, scale):
  H, D, G = heads, dim_head, slice_num
  phase = pl.program_id(1)
  t = pl.program_id(2)

  x = x_ref[0]                                                   # (TN, C) bf16
  tn = x.shape[0]

  # ---- shared by both phases: x_mid and the per-head slice weights ---------
  x_mid = (jnp.dot(x, wx_ref[...], preferred_element_type=jnp.float32)
           + bx_ref[...])                                        # (TN, H*D) f32

  sw_heads = []
  for h in range(H):
    xm_h = x_mid[:, h * D:(h + 1) * D].astype(jnp.bfloat16)
    # 1/temperature is already folded into wsl / bsl in the wrapper.
    logits = (jnp.dot(xm_h, wsl_ref[h], preferred_element_type=jnp.float32)
              + bsl_ref[h])                                      # (TN, G) f32
    logits = logits - jnp.max(logits, axis=-1, keepdims=True)
    e = jnp.exp(logits)
    sw_heads.append(
        e * pl.reciprocal(jnp.sum(e, axis=-1, keepdims=True), approx=True))

  # ---- phase 0: pool slice tokens across token tiles ------------------------
  @pl.when((phase == 0) & (t == 0))
  def _zero_accumulators():
    st_acc[...] = jnp.zeros_like(st_acc)
    norm_acc[...] = jnp.zeros_like(norm_acc)

  @pl.when(phase == 0)
  def _pool_slice_tokens():
    fx_mid = (jnp.dot(x, wfx_ref[...], preferred_element_type=jnp.float32)
              + bfx_ref[...])                                    # (TN, H*D) f32
    ones_col = jnp.ones((tn, 1), jnp.bfloat16)
    for h in range(H):
      sw_b = sw_heads[h].astype(jnp.bfloat16)                    # (TN, G)
      fx_h = fx_mid[:, h * D:(h + 1) * D].astype(jnp.bfloat16)   # (TN, D)
      # (G, D) += sw^T @ fx   (contract the token axis; no materialized .T)
      st_acc[h * G:(h + 1) * G, :] += lax.dot_general(
          sw_b, fx_h, (((0,), (0,)), ((), ())),
          preferred_element_type=jnp.float32)
      # (G, 1) += sw^T @ 1  -> per-slice normalizer, directly in sublane layout
      norm_acc[h * G:(h + 1) * G, :] += lax.dot_general(
          sw_b, ones_col, (((0,), (0,)), ((), ())),
          preferred_element_type=jnp.float32)

  # ---- phase 0 -> 1 boundary: attention among slice tokens ------------------
  @pl.when((phase == 1) & (t == 0))
  def _slice_attention():
    inv_n = pl.reciprocal(norm_acc[...] + 1e-5, approx=True)     # (H*G, 1)
    st = (st_acc[...] * inv_n).astype(jnp.bfloat16)              # (H*G, D)
    qkv = jnp.dot(st, wqkv_ref[...],
                  preferred_element_type=jnp.float32)            # (H*G, 3D)
    wout = wout_ref[...]                                         # (H*D, C) bf16
    for h in range(H):
      qkv_h = qkv[h * G:(h + 1) * G, :]
      q = qkv_h[:, :D].astype(jnp.bfloat16)
      k = qkv_h[:, D:2 * D].astype(jnp.bfloat16)
      v = qkv_h[:, 2 * D:].astype(jnp.bfloat16)
      dots = lax.dot_general(q, k, (((1,), (1,)), ((), ())),
                             preferred_element_type=jnp.float32) * scale
      dots = dots - jnp.max(dots, axis=-1, keepdims=True)
      e = jnp.exp(dots)
      attn = (e * pl.reciprocal(jnp.sum(e, axis=-1, keepdims=True),
                                approx=True)).astype(jnp.bfloat16)
      o_h = jnp.dot(attn, v, preferred_element_type=jnp.float32)  # (G, D)
      # Fold this head's slice of to_out now so phase 1 is one matmul per tile.
      osp_acc[h * G:(h + 1) * G, :] = jnp.dot(
          o_h.astype(jnp.bfloat16), wout[h * D:(h + 1) * D, :],
          preferred_element_type=jnp.float32)

  # ---- phase 1: de-slice + to_out, one matmul per token tile ----------------
  # NOTE: dropout in the PyTorch module is p=0.0 / eval mode -> identity.
  @pl.when(phase == 1)
  def _deslice_and_project():
    sw_all = jnp.concatenate(
        [s.astype(jnp.bfloat16) for s in sw_heads], axis=1)      # (TN, H*G)
    out_ref[0] = (jnp.dot(sw_all, osp_acc[...].astype(jnp.bfloat16),
                          preferred_element_type=jnp.float32)
                  + bout_ref[...])


def _pick_block_n(n, max_block):
  """Largest token tile <= max_block that divides N and is sublane-aligned."""
  if n <= max_block:
    return n
  for cand in range(max_block - max_block % 8, 7, -8):
    if n % cand == 0:
      return cand
  # TODO(synk): pad N for awkward sizes instead of falling back to full N.
  return n


def physics_attention(x, params, *, heads, dim_head, slice_num, block_n=512):
  B, N, C = x.shape
  H, D, G = heads, dim_head, slice_num
  HD = H * D
  scale = D ** (-0.5)

  # Token tile: multiple of 8 that divides N.  512 keeps the per-step working
  # set comfortably inside v7x's 64 MiB VMEM; v5e/v6e (128 MiB) could use 1024.
  TN = _pick_block_n(N, block_n)
  assert N % TN == 0
  NT = N // TN

  # bf16 MXU operands (f32 accumulation in-kernel); biases stay f32.
  tinv = (1.0 / params["temp"]).astype(jnp.float32)              # (H,)
  xb = x.astype(jnp.bfloat16)
  wfx = params["wfx"].astype(jnp.bfloat16)
  bfx = params["bfx"].astype(jnp.float32)
  wx = params["wx"].astype(jnp.bfloat16)
  bx = params["bx"].astype(jnp.float32)
  # Fold 1/temperature into the slice projection: (x@W + b)/T == x@(W/T) + b/T.
  wsl = (params["wsl"][None] * tinv[:, None, None]).astype(jnp.bfloat16)  # (H,D,G)
  bsl = (params["bsl"][None] * tinv[:, None, None]).astype(jnp.float32)   # (H,1,G)
  wqkv = jnp.concatenate([params["wq"], params["wk"], params["wv"]],
                         axis=1).astype(jnp.bfloat16)            # (D, 3D)
  wout = params["wout"].astype(jnp.bfloat16)                     # (HD, C)
  bout = params["bout"].astype(jnp.float32)                      # (1, C)

  kernel = functools.partial(_physics_attention_kernel, heads=H, dim_head=D,
                             slice_num=G, scale=scale)

  grid_spec = pltpu.PrefetchScalarGridSpec(
      num_scalar_prefetch=0,
      grid=(B, 2, NT),                        # (batch, phase, token tile)
      in_specs=[
          pl.BlockSpec((1, TN, C), lambda b, p, t: (b, t, 0)),   # x
          pl.BlockSpec((C, HD), lambda b, p, t: (0, 0)),         # wfx
          pl.BlockSpec((1, HD), lambda b, p, t: (0, 0)),         # bfx
          pl.BlockSpec((C, HD), lambda b, p, t: (0, 0)),         # wx
          pl.BlockSpec((1, HD), lambda b, p, t: (0, 0)),         # bx
          pl.BlockSpec((H, D, G), lambda b, p, t: (0, 0, 0)),    # wsl (/temp)
          pl.BlockSpec((H, 1, G), lambda b, p, t: (0, 0, 0)),    # bsl (/temp)
          pl.BlockSpec((D, 3 * D), lambda b, p, t: (0, 0)),      # wqkv fused
          pl.BlockSpec((HD, C), lambda b, p, t: (0, 0)),         # wout
          pl.BlockSpec((1, C), lambda b, p, t: (0, 0)),          # bout
      ],
      # p*t keeps the output block pinned at (b, 0) during phase 0, so no
      # garbage write-backs occur; every block gets exactly one visit interval.
      out_specs=pl.BlockSpec((1, TN, C), lambda b, p, t: (b, p * t, 0)),
      scratch_shapes=[
          pltpu.VMEM((H * G, D), jnp.float32),    # slice-token numerator
          pltpu.VMEM((H * G, 1), jnp.float32),    # slice-norm accumulator
          pltpu.VMEM((H * G, C), jnp.float32),    # attn-out @ to_out (per head)
      ],
  )

  flops = int(
      3 * 2 * B * N * C * HD                # fx / x projections (x twice)
      + 2 * 2 * B * N * HD * G              # slice logits (both phases)
      + 2 * B * N * HD * G                  # slice-token pooling
      + 2 * B * N * H * G                   # slice-norm pooling
      + 2 * B * H * G * (3 * D * D + 2 * G * D + D * C)  # qkv + attn + proj
      + 2 * B * N * H * G * C)              # de-slice fused with to_out
  transcendentals = int(2 * B * N * H * G + B * H * G * G)
  bytes_accessed = int(
      2 * B * N * C * 2                     # x read in both phases (bf16)
      + B * N * C * 4                       # output (f32)
      + 2 * (2 * C * HD + HD * C + H * D * G + 3 * D * D)  # bf16 weights
      + 4 * (2 * HD + H * G + C))           # f32 biases

  return pl.pallas_call(
      kernel,
      out_shape=jax.ShapeDtypeStruct((B, N, C), jnp.float32),
      grid_spec=grid_spec,
      compiler_params=pltpu.CompilerParams(
          dimension_semantics=("parallel", "arbitrary", "arbitrary"),
          vmem_limit_bytes=48 * 1024 * 1024),
      cost_estimate=pl.CostEstimate(flops=flops,
                                    transcendentals=transcendentals,
                                    bytes_accessed=bytes_accessed),
  )(xb, wfx, bfx, wx, bx, wsl, bsl, wqkv, wout, bout)


def physics_attention_reference(x, params, *, heads, dim_head):
  """Pure-JAX f32 reference mirroring the PyTorch forward, for validation."""
  H, D = heads, dim_head
  B, N, C = x.shape
  scale = D ** (-0.5)
  with jax.default_matmul_precision("highest"):
    fx = x @ params["wfx"] + params["bfx"]
    xm = x @ params["wx"] + params["bx"]
    fx = fx.reshape(B, N, H, D).transpose(0, 2, 1, 3)            # (B,H,N,D)
    xm = xm.reshape(B, N, H, D).transpose(0, 2, 1, 3)
    logits = jnp.einsum("bhnd,dg->bhng", xm, params["wsl"]) + params["bsl"]
    logits = logits / params["temp"][None, :, None, None]
    sw = jax.nn.softmax(logits, axis=-1)                         # (B,H,N,G)
    norm = sw.sum(axis=2)                                        # (B,H,G)
    st = jnp.einsum("bhnd,bhng->bhgd", fx, sw) / (norm + 1e-5)[..., None]
    q = st @ params["wq"]
    k = st @ params["wk"]
    v = st @ params["wv"]
    attn = jax.nn.softmax(jnp.einsum("bhgd,bhkd->bhgk", q, k) * scale, axis=-1)
    os = jnp.einsum("bhgk,bhkd->bhgd", attn, v)
    ox = jnp.einsum("bhgd,bhng->bhnd", os, sw)
    ox = ox.transpose(0, 2, 1, 3).reshape(B, N, H * D)
    return ox @ params["wout"] + params["bout"]


def init_params(key, *, dim, heads, dim_head, slice_num):
  """Synthetic params in PyTorch nn.Linear layout, pre-transposed to (in, out)."""
  C, H, D, G = dim, heads, dim_head, slice_num
  ks = jax.random.split(key, 11)
  s = 0.05
  p = {
      "wfx": jax.random.normal(ks[0], (C, H * D)) * s,
      "bfx": jax.random.normal(ks[1], (1, H * D)) * s,
      "wx": jax.random.normal(ks[2], (C, H * D)) * s,
      "bx": jax.random.normal(ks[3], (1, H * D)) * s,
      # TODO(synk): PyTorch uses orthogonal init for in_project_slice; plain
      # Gaussian here (forward math identical).
      "wsl": jax.random.normal(ks[4], (D, G)) * s,
      "bsl": jax.random.normal(ks[5], (1, G)) * s,
      "wq": jax.random.normal(ks[6], (D, D)) * s,
      "wk": jax.random.normal(ks[7], (D, D)) * s,
      "wv": jax.random.normal(ks[8], (D, D)) * s,
      "wout": jax.random.normal(ks[9], (H * D, C)) * s,
      "bout": jax.random.normal(ks[10], (1, C)) * s,
  }
  p = {k: v.astype(jnp.float32) for k, v in p.items()}
  p["temp"] = jnp.full((H,), 0.5, jnp.float32)
  return p


if __name__ == "__main__":
  B, N, C = 2, 64, 32                   # batch, tokens, dim
  heads, dim_head, slice_num = 2, 16, 16

  key = jax.random.PRNGKey(0)
  kx, kp = jax.random.split(key)
  x = jax.random.normal(kx, (B, N, C), dtype=jnp.float32)
  params = init_params(kp, dim=C, heads=heads, dim_head=dim_head,
                       slice_num=slice_num)

  out = jax.block_until_ready(
      physics_attention(x, params, heads=heads, dim_head=dim_head,
                        slice_num=slice_num))
  ref = jax.block_until_ready(
      physics_attention_reference(x, params, heads=heads, dim_head=dim_head))

  # bf16 MXU operands + approx reciprocals -> slightly looser tolerance than
  # the previous all-f32 "highest precision" version.
  np.testing.assert_allclose(np.asarray(out), np.asarray(ref),
                             rtol=2e-2, atol=2e-3)
  print("KERNEL_OK")
</pallas_src>

<mosaic_0001>
module attributes {stable_mosaic.version = 11 : i64} {
  func.func @_physics_attention_kernel(%arg0: i32, %arg1: i32, %arg2: i32, %arg3: memref<1x64x32xbf16, #tpu.memory_space<vmem>>, %arg4: memref<32x32xbf16, #tpu.memory_space<vmem>>, %arg5: memref<1x32xf32, #tpu.memory_space<vmem>>, %arg6: memref<32x32xbf16, #tpu.memory_space<vmem>>, %arg7: memref<1x32xf32, #tpu.memory_space<vmem>>, %arg8: memref<2x16x16xbf16, #tpu.memory_space<vmem>>, %arg9: memref<2x1x16xf32, #tpu.memory_space<vmem>>, %arg10: memref<16x48xbf16, #tpu.memory_space<vmem>>, %arg11: memref<32x32xbf16, #tpu.memory_space<vmem>>, %arg12: memref<1x32xf32, #tpu.memory_space<vmem>>, %arg13: memref<1x64x32xf32, #tpu.memory_space<vmem>>, %arg14: memref<32x16xf32, #tpu.memory_space<vmem>>, %arg15: memref<32x1xf32, #tpu.memory_space<vmem>>, %arg16: memref<32x32xf32, #tpu.memory_space<vmem>>) attributes {dimension_semantics = [#tpu.dimension_semantics<parallel>, #tpu.dimension_semantics<arbitrary>, #tpu.dimension_semantics<arbitrary>], iteration_bounds = array<i64: 2, 2, 1>, scalar_prefetch = 0 : i64, scratch_operands = 3 : i64, tpu.core_type = #tpu.core_type<tc>, window_params = [{transform_indices = @transform_0, window_bounds = array<i64: 1, 64, 32>}, {pipeline_mode = #tpu.pipeline_mode<synchronous>, transform_indices = @transform_1, window_bounds = array<i64: 32, 32>}, {pipeline_mode = #tpu.pipeline_mode<synchronous>, transform_indices = @transform_2, window_bounds = array<i64: 1, 32>}, {pipeline_mode = #tpu.pipeline_mode<synchronous>, transform_indices = @transform_3, window_bounds = array<i64: 32, 32>}, {pipeline_mode = #tpu.pipeline_mode<synchronous>, transform_indices = @transform_4, window_bounds = array<i64: 1, 32>}, {pipeline_mode = #tpu.pipeline_mode<synchronous>, transform_indices = @transform_5, window_bounds = array<i64: 2, 16, 16>}, {pipeline_mode = #tpu.pipeline_mode<synchronous>, transform_indices = @transform_6, window_bounds = array<i64: 2, 1, 16>}, {pipeline_mode = #tpu.pipeline_mode<synchronous>, transform_indices = @transform_7, window_bounds = array<i64: 16, 48>}, {pipeline_mode = #tpu.pipeline_mode<synchronous>, transform_indices = @transform_8, window_bounds = array<i64: 32, 32>}, {pipeline_mode = #tpu.pipeline_mode<synchronous>, transform_indices = @transform_9, window_bounds = array<i64: 1, 32>}, {transform_indices = @transform_10, window_bounds = array<i64: 1, 64, 32>}]} {
    %c0 = arith.constant 0 : index
    %c0_0 = arith.constant 0 : index
    %c0_1 = arith.constant 0 : index
    %0 = vector.load %arg3[%c0, %c0_0, %c0_1] : memref<1x64x32xbf16, #tpu.memory_space<vmem>>, vector<1x64x32xbf16>
    %1 = vector.shape_cast %0 : vector<1x64x32xbf16> to vector<64x32xbf16>
    %c0_2 = arith.constant 0 : index
    %c0_3 = arith.constant 0 : index
    %2 = vector.load %arg6[%c0_2, %c0_3] : memref<32x32xbf16, #tpu.memory_space<vmem>>, vector<32x32xbf16>
    %cst = arith.constant dense<0.000000e+00> : vector<64x32xf32>
    %3 = tpu.matmul %1, %2, %cst {dimension_numbers = #tpu.dot_dimension_numbers<[1], [0], [0], [1], [0, 0, 1, 1], [], []>} : vector<64x32xbf16>, vector<32x32xbf16>, vector<64x32xf32> -> vector<64x32xf32>
    %c0_4 = arith.constant 0 : index
    %c0_5 = arith.constant 0 : index
    %4 = vector.load %arg7[%c0_4, %c0_5] : memref<1x32xf32, #tpu.memory_space<vmem>>, vector<1x32xf32>
    %5 = vector.broadcast %4 : vector<1x32xf32> to vector<64x32xf32>
    %6 = arith.addf %3, %5 : vector<64x32xf32>
    %7 = vector.extract_strided_slice %6 {offsets = [0, 0], sizes = [64, 16], strides = [1, 1]} : vector<64x32xf32> to vector<64x16xf32>
    %8 = arith.truncf %7 : vector<64x16xf32> to vector<64x16xbf16>
    %c0_6 = arith.constant 0 : index
    %c0_7 = arith.constant 0 : index
    %c0_8 = arith.constant 0 : index
    %9 = vector.load %arg8[%c0_6, %c0_7, %c0_8] : memref<2x16x16xbf16, #tpu.memory_space<vmem>>, vector<1x16x16xbf16>
    %10 = vector.shape_cast %9 : vector<1x16x16xbf16> to vector<16x16xbf16>
    %cst_9 = arith.constant dense<0.000000e+00> : vector<64x16xf32>
    %11 = tpu.matmul %8, %10, %cst_9 {dimension_numbers = #tpu.dot_dimension_numbers<[1], [0], [0], [1], [0, 0, 1, 1], [], []>} : vector<64x16xbf16>, vector<16x16xbf16>, vector<64x16xf32> -> vector<64x16xf32>
    %c0_10 = arith.constant 0 : index
    %c0_11 = arith.constant 0 : index
    %c0_12 = arith.constant 0 : index
    %12 = vector.load %arg9[%c0_10, %c0_11, %c0_12] : memref<2x1x16xf32, #tpu.memory_space<vmem>>, vector<1x1x16xf32>
    %13 = vector.shape_cast %12 : vector<1x1x16xf32> to vector<1x16xf32>
    %14 = vector.broadcast %13 : vector<1x16xf32> to vector<64x16xf32>
    %15 = arith.addf %11, %14 : vector<64x16xf32>
    %cst_13 = arith.constant dense<0xFF800000> : vector<64xf32>
    %16 = vector.multi_reduction <maximumf>, %15, %cst_13 [1] : vector<64x16xf32> to vector<64xf32>
    %17 = vector.shape_cast %16 : vector<64xf32> to vector<64x1xf32>
    %18 = vector.broadcast %17 : vector<64x1xf32> to vector<64x16xf32>
    %19 = arith.subf %15, %18 : vector<64x16xf32>
    %20 = math.exp %19 : vector<64x16xf32>
    %cst_14 = arith.constant dense<0.000000e+00> : vector<64xf32>
    %21 = vector.multi_reduction <add>, %20, %cst_14 [1] : vector<64x16xf32> to vector<64xf32>
    %22 = vector.shape_cast %21 : vector<64xf32> to vector<64x1xf32>
    %23 = tpu.reciprocal %22 {approx = true} : vector<64x1xf32> -> vector<64x1xf32>
    %24 = vector.broadcast %23 : vector<64x1xf32> to vector<64x16xf32>
    %25 = arith.mulf %20, %24 : vector<64x16xf32>
    %26 = vector.extract_strided_slice %6 {offsets = [0, 16], sizes = [64, 16], strides = [1, 1]} : vector<64x32xf32> to vector<64x16xf32>
    %27 = arith.truncf %26 : vector<64x16xf32> to vector<64x16xbf16>
    %c1 = arith.constant 1 : index
    %c0_15 = arith.constant 0 : index
    %c0_16 = arith.constant 0 : index
    %28 = vector.load %arg8[%c1, %c0_15, %c0_16] : memref<2x16x16xbf16, #tpu.memory_space<vmem>>, vector<1x16x16xbf16>
    %29 = vector.shape_cast %28 : vector<1x16x16xbf16> to vector<16x16xbf16>
    %cst_17 = arith.constant dense<0.000000e+00> : vector<64x16xf32>
    %30 = tpu.matmul %27, %29, %cst_17 {dimension_numbers = #tpu.dot_dimension_numbers<[1], [0], [0], [1], [0, 0, 1, 1], [], []>} : vector<64x16xbf16>, vector<16x16xbf16>, vector<64x16xf32> -> vector<64x16xf32>
    %c1_18 = arith.constant 1 : index
    %c0_19 = arith.constant 0 : index
    %c0_20 = arith.constant 0 : index
    %31 = vector.load %arg9[%c1_18, %c0_19, %c0_20] : memref<2x1x16xf32, #tpu.memory_space<vmem>>, vector<1x1x16xf32>
    %32 = vector.shape_cast %31 : vector<1x1x16xf32> to vector<1x16xf32>
    %33 = vector.broadcast %32 : vector<1x16xf32> to vector<64x16xf32>
    %34 = arith.addf %30, %33 : vector<64x16xf32>
    %cst_21 = arith.constant dense<0xFF800000> : vector<64xf32>
    %35 = vector.multi_reduction <maximumf>, %34, %cst_21 [1] : vector<64x16xf32> to vector<64xf32>
    %36 = vector.shape_cast %35 : vector<64xf32> to vector<64x1xf32>
    %37 = vector.broadcast %36 : vector<64x1xf32> to vector<64x16xf32>
    %38 = arith.subf %34, %37 : vector<64x16xf32>
    %39 = math.exp %38 : vector<64x16xf32>
    %cst_22 = arith.constant dense<0.000000e+00> : vector<64xf32>
    %40 = vector.multi_reduction <add>, %39, %cst_22 [1] : vector<64x16xf32> to vector<64xf32>
    %41 = vector.shape_cast %40 : vector<64xf32> to vector<64x1xf32>
    %42 = tpu.reciprocal %41 {approx = true} : vector<64x1xf32> -> vector<64x1xf32>
    %43 = vector.broadcast %42 : vector<64x1xf32> to vector<64x16xf32>
    %44 = arith.mulf %39, %43 : vector<64x16xf32>
    %c0_i32 = arith.constant 0 : i32
    %45 = arith.cmpi eq, %arg1, %c0_i32 : i32
    %c0_i32_23 = arith.constant 0 : i32
    %46 = arith.cmpi eq, %arg2, %c0_i32_23 : i32
    %47 = arith.andi %45, %46 : i1
    %48 = arith.extui %47 : i1 to i32
    %c0_i32_24 = arith.constant 0 : i32
    %49 = arith.cmpi ne, %48, %c0_i32_24 : i32
    scf.if %49 {
      %cst_31 = arith.constant 0.000000e+00 : f32
      %61 = vector.broadcast %cst_31 : f32 to vector<32x16xf32>
      %c0_32 = arith.constant 0 : index
      %c0_33 = arith.constant 0 : index
      %62 = vector.load %arg14[%c0_32, %c0_33] : memref<32x16xf32, #tpu.memory_space<vmem>>, vector<32x16xf32>
      tpu.vector_store %arg14[%c0_32, %c0_33], %61 {strides = array<i32>} : memref<32x16xf32, #tpu.memory_space<vmem>>, vector<32x16xf32>,
      %cst_34 = arith.constant 0.000000e+00 : f32
      %63 = vector.broadcast %cst_34 : f32 to vector<32x1xf32>
      %c0_35 = arith.constant 0 : index
      %c0_36 = arith.constant 0 : index
      %64 = vector.load %arg15[%c0_35, %c0_36] : memref<32x1xf32, #tpu.memory_space<vmem>>, vector<32x1xf32>
      tpu.vector_store %arg15[%c0_35, %c0_36], %63 {strides = array<i32>} : memref<32x1xf32, #tpu.memory_space<vmem>>, vector<32x1xf32>,
    } else {
    }
    %c0_i32_25 = arith.constant 0 : i32
    %50 = arith.cmpi eq, %arg1, %c0_i32_25 : i32
    %51 = arith.extui %50 : i1 to i32
    %c0_i32_26 = arith.constant 0 : i32
    %52 = arith.cmpi ne, %51, %c0_i32_26 : i32
    scf.if %52 {
      %c0_31 = arith.constant 0 : index
      %c0_32 = arith.constant 0 : index
      %61 = vector.load %arg4[%c0_31, %c0_32] : memref<32x32xbf16, #tpu.memory_space<vmem>>, vector<32x32xbf16>
      %cst_33 = arith.constant dense<0.000000e+00> : vector<64x32xf32>
      %62 = tpu.matmul %1, %61, %cst_33 {dimension_numbers = #tpu.dot_dimension_numbers<[1], [0], [0], [1], [0, 0, 1, 1], [], []>} : vector<64x32xbf16>, vector<32x32xbf16>, vector<64x32xf32> -> vector<64x32xf32>
      %c0_34 = arith.constant 0 : index
      %c0_35 = arith.constant 0 : index
      %63 = vector.load %arg5[%c0_34, %c0_35] : memref<1x32xf32, #tpu.memory_space<vmem>>, vector<1x32xf32>
      %64 = vector.broadcast %63 : vector<1x32xf32> to vector<64x32xf32>
      %65 = arith.addf %62, %64 : vector<64x32xf32>
      %cst_36 = arith.constant 1.000000e+00 : bf16
      %66 = vector.broadcast %cst_36 : bf16 to vector<64x1xbf16>
      %67 = arith.truncf %25 : vector<64x16xf32> to vector<64x16xbf16>
      %68 = vector.extract_strided_slice %65 {offsets = [0, 0], sizes = [64, 16], strides = [1, 1]} : vector<64x32xf32> to vector<64x16xf32>
      %69 = arith.truncf %68 : vector<64x16xf32> to vector<64x16xbf16>
      %c0_37 = arith.constant 0 : index
      %c0_38 = arith.constant 0 : index
      %70 = vector.load %arg14[%c0_37, %c0_38] : memref<32x16xf32, #tpu.memory_space<vmem>>, vector<16x16xf32>
      %cst_39 = arith.constant dense<0.000000e+00> : vector<16x16xf32>
      %71 = tpu.matmul %67, %69, %cst_39 {dimension_numbers = #tpu.dot_dimension_numbers<[0], [0], [1], [1], [0, 1, 1, 1], [], []>} : vector<64x16xbf16>, vector<64x16xbf16>, vector<16x16xf32> -> vector<16x16xf32>
      %72 = arith.addf %70, %71 : vector<16x16xf32>
      %c0_40 = arith.constant 0 : index
      %c0_41 = arith.constant 0 : index
      %73 = vector.load %arg14[%c0_40, %c0_41] : memref<32x16xf32, #tpu.memory_space<vmem>>, vector<16x16xf32>
      tpu.vector_store %arg14[%c0_40, %c0_41], %72 {strides = array<i32>} : memref<32x16xf32, #tpu.memory_space<vmem>>, vector<16x16xf32>,
      %c0_42 = arith.constant 0 : index
      %c0_43 = arith.constant 0 : index
      %74 = vector.load %arg15[%c0_42, %c0_43] : memref<32x1xf32, #tpu.memory_space<vmem>>, vector<16x1xf32>
      %cst_44 = arith.constant dense<0.000000e+00> : vector<16x1xf32>
      %75 = tpu.matmul %67, %66, %cst_44 {dimension_numbers = #tpu.dot_dimension_numbers<[0], [0], [1], [1], [0, 1, 1, 1], [], []>} : vector<64x16xbf16>, vector<64x1xbf16>, vector<16x1xf32> -> vector<16x1xf32>
      %76 = arith.addf %74, %75 : vector<16x1xf32>
      %c0_45 = arith.constant 0 : index
      %c0_46 = arith.constant 0 : index
      %77 = vector.load %arg15[%c0_45, %c0_46] : memref<32x1xf32, #tpu.memory_space<vmem>>, vector<16x1xf32>
      tpu.vector_store %arg15[%c0_45, %c0_46], %76 {strides = array<i32>} : memref<32x1xf32, #tpu.memory_space<vmem>>, vector<16x1xf32>,
      %78 = arith.truncf %44 : vector<64x16xf32> to vector<64x16xbf16>
      %79 = vector.extract_strided_slice %65 {offsets = [0, 16], sizes = [64, 16], strides = [1, 1]} : vector<64x32xf32> to vector<64x16xf32>
      %80 = arith.truncf %79 : vector<64x16xf32> to vector<64x16xbf16>
      %c16 = arith.constant 16 : index
      %c0_47 = arith.constant 0 : index
      %81 = vector.load %arg14[%c16, %c0_47] : memref<32x16xf32, #tpu.memory_space<vmem>>, vector<16x16xf32>
      %cst_48 = arith.constant dense<0.000000e+00> : vector<16x16xf32>
      %82 = tpu.matmul %78, %80, %cst_48 {dimension_numbers = #tpu.dot_dimension_numbers<[0], [0], [1], [1], [0, 1, 1, 1], [], []>} : vector<64x16xbf16>, vector<64x16xbf16>, vector<16x16xf32> -> vector<16x16xf32>
      %83 = arith.addf %81, %82 : vector<16x16xf32>
      %c16_49 = arith.constant 16 : index
      %c0_50 = arith.constant 0 : index
      %84 = vector.load %arg14[%c16_49, %c0_50] : memref<32x16xf32, #tpu.memory_space<vmem>>, vector<16x16xf32>
      tpu.vector_store %arg14[%c16_49, %c0_50], %83 {strides = array<i32>} : memref<32x16xf32, #tpu.memory_space<vmem>>, vector<16x16xf32>,
      %c16_51 = arith.constant 16 : index
      %c0_52 = arith.constant 0 : index
      %85 = vector.load %arg15[%c16_51, %c0_52] : memref<32x1xf32, #tpu.memory_space<vmem>>, vector<16x1xf32>
      %cst_53 = arith.constant dense<0.000000e+00> : vector<16x1xf32>
      %86 = tpu.matmul %78, %66, %cst_53 {dimension_numbers = #tpu.dot_dimension_numbers<[0], [0], [1], [1], [0, 1, 1, 1], [], []>} : vector<64x16xbf16>, vector<64x1xbf16>, vector<16x1xf32> -> vector<16x1xf32>
      %87 = arith.addf %85, %86 : vector<16x1xf32>
      %c16_54 = arith.constant 16 : index
      %c0_55 = arith.constant 0 : index
      %88 = vector.load %arg15[%c16_54, %c0_55] : memref<32x1xf32, #tpu.memory_space<vmem>>, vector<16x1xf32>
      tpu.vector_store %arg15[%c16_54, %c0_55], %87 {strides = array<i32>} : memref<32x1xf32, #tpu.memory_space<vmem>>, vector<16x1xf32>,
    } else {
    }
    %c1_i32 = arith.constant 1 : i32
    %53 = arith.cmpi eq, %arg1, %c1_i32 : i32
    %c0_i32_27 = arith.constant 0 : i32
    %54 = arith.cmpi eq, %arg2, %c0_i32_27 : i32
    %55 = arith.andi %53, %54 : i1
    %56 = arith.extui %55 : i1 to i32
    %c0_i32_28 = arith.constant 0 : i32
    %57 = arith.cmpi ne, %56, %c0_i32_28 : i32
    scf.if %57 {
      %c0_31 = arith.constant 0 : index
      %c0_32 = arith.constant 0 : index
      %61 = vector.load %arg15[%c0_31, %c0_32] : memref<32x1xf32, #tpu.memory_space<vmem>>, vector<32x1xf32>
      %cst_33 = arith.constant 9.99999974E-6 : f32
      %62 = vector.broadcast %cst_33 : f32 to vector<32x1xf32>
      %63 = arith.addf %61, %62 : vector<32x1xf32>
      %64 = tpu.reciprocal %63 {approx = true} : vector<32x1xf32> -> vector<32x1xf32>
      %c0_34 = arith.constant 0 : index
      %c0_35 = arith.constant 0 : index
      %65 = vector.load %arg14[%c0_34, %c0_35] : memref<32x16xf32, #tpu.memory_space<vmem>>, vector<32x16xf32>
      %66 = vector.broadcast %64 : vector<32x1xf32> to vector<32x16xf32>
      %67 = arith.mulf %65, %66 : vector<32x16xf32>
      %68 = arith.truncf %67 : vector<32x16xf32> to vector<32x16xbf16>
      %c0_36 = arith.constant 0 : index
      %c0_37 = arith.constant 0 : index
      %69 = vector.load %arg10[%c0_36, %c0_37] : memref<16x48xbf16, #tpu.memory_space<vmem>>, vector<16x48xbf16>
      %cst_38 = arith.constant dense<0.000000e+00> : vector<32x48xf32>
      %70 = tpu.matmul %68, %69, %cst_38 {dimension_numbers = #tpu.dot_dimension_numbers<[1], [0], [0], [1], [0, 0, 1, 1], [], []>} : vector<32x16xbf16>, vector<16x48xbf16>, vector<32x48xf32> -> vector<32x48xf32>
      %c0_39 = arith.constant 0 : index
      %c0_40 = arith.constant 0 : index
      %71 = vector.load %arg11[%c0_39, %c0_40] : memref<32x32xbf16, #tpu.memory_space<vmem>>, vector<32x32xbf16>
      %72 = vector.extract_strided_slice %70 {offsets = [0, 0], sizes = [16, 48], strides = [1, 1]} : vector<32x48xf32> to vector<16x48xf32>
      %73 = vector.extract_strided_slice %72 {offsets = [0, 0], sizes = [16, 16], strides = [1, 1]} : vector<16x48xf32> to vector<16x16xf32>
      %74 = arith.truncf %73 : vector<16x16xf32> to vector<16x16xbf16>
      %75 = vector.extract_strided_slice %72 {offsets = [0, 16], sizes = [16, 16], strides = [1, 1]} : vector<16x48xf32> to vector<16x16xf32>
      %76 = arith.truncf %75 : vector<16x16xf32> to vector<16x16xbf16>
      %77 = vector.extract_strided_slice %72 {offsets = [0, 32], sizes = [16, 16], strides = [1, 1]} : vector<16x48xf32> to vector<16x16xf32>
      %78 = arith.truncf %77 : vector<16x16xf32> to vector<16x16xbf16>
      %cst_41 = arith.constant dense<0.000000e+00> : vector<16x16xf32>
      %79 = tpu.matmul %74, %76, %cst_41 {dimension_numbers = #tpu.dot_dimension_numbers<[1], [1], [0], [0], [0, 0, 1, 0], [], []>} : vector<16x16xbf16>, vector<16x16xbf16>, vector<16x16xf32> -> vector<16x16xf32>
      %cst_42 = arith.constant 2.500000e-01 : f32
      %80 = vector.broadcast %cst_42 : f32 to vector<16x16xf32>
      %81 = arith.mulf %79, %80 : vector<16x16xf32>
      %cst_43 = arith.constant dense<0xFF800000> : vector<16xf32>
      %82 = vector.multi_reduction <maximumf>, %81, %cst_43 [1] : vector<16x16xf32> to vector<16xf32>
      %83 = vector.shape_cast %82 : vector<16xf32> to vector<16x1xf32>
      %84 = vector.broadcast %83 : vector<16x1xf32> to vector<16x16xf32>
      %85 = arith.subf %81, %84 : vector<16x16xf32>
      %86 = math.exp %85 : vector<16x16xf32>
      %cst_44 = arith.constant dense<0.000000e+00> : vector<16xf32>
      %87 = vector.multi_reduction <add>, %86, %cst_44 [1] : vector<16x16xf32> to vector<16xf32>
      %88 = vector.shape_cast %87 : vector<16xf32> to vector<16x1xf32>
      %89 = tpu.reciprocal %88 {approx = true} : vector<16x1xf32> -> vector<16x1xf32>
      %90 = vector.broadcast %89 : vector<16x1xf32> to vector<16x16xf32>
      %91 = arith.mulf %86, %90 : vector<16x16xf32>
      %92 = arith.truncf %91 : vector<16x16xf32> to vector<16x16xbf16>
      %cst_45 = arith.constant dense<0.000000e+00> : vector<16x16xf32>
      %93 = tpu.matmul %92, %78, %cst_45 {dimension_numbers = #tpu.dot_dimension_numbers<[1], [0], [0], [1], [0, 0, 1, 1], [], []>} : vector<16x16xbf16>, vector<16x16xbf16>, vector<16x16xf32> -> vector<16x16xf32>
      %94 = arith.truncf %93 : vector<16x16xf32> to vector<16x16xbf16>
      %95 = vector.extract_strided_slice %71 {offsets = [0, 0], sizes = [16, 32], strides = [1, 1]} : vector<32x32xbf16> to vector<16x32xbf16>
      %cst_46 = arith.constant dense<0.000000e+00> : vector<16x32xf32>
      %96 = tpu.matmul %94, %95, %cst_46 {dimension_numbers = #tpu.dot_dimension_numbers<[1], [0], [0], [1], [0, 0, 1, 1], [], []>} : vector<16x16xbf16>, vector<16x32xbf16>, vector<16x32xf32> -> vector<16x32xf32>
      %c0_47 = arith.constant 0 : index
      %c0_48 = arith.constant 0 : index
      %97 = vector.load %arg16[%c0_47, %c0_48] : memref<32x32xf32, #tpu.memory_space<vmem>>, vector<16x32xf32>
      tpu.vector_store %arg16[%c0_47, %c0_48], %96 {strides = array<i32>} : memref<32x32xf32, #tpu.memory_space<vmem>>, vector<16x32xf32>,
      %98 = vector.extract_strided_slice %70 {offsets = [16, 0], sizes = [16, 48], strides = [1, 1]} : vector<32x48xf32> to vector<16x48xf32>
      %99 = vector.extract_strided_slice %98 {offsets = [0, 0], sizes = [16, 16], strides = [1, 1]} : vector<16x48xf32> to vector<16x16xf32>
      %100 = arith.truncf %99 : vector<16x16xf32> to vector<16x16xbf16>
      %101 = vector.extract_strided_slice %98 {offsets = [0, 16], sizes = [16, 16], strides = [1, 1]} : vector<16x48xf32> to vector<16x16xf32>
      %102 = arith.truncf %101 : vector<16x16xf32> to vector<16x16xbf16>
      %103 = vector.extract_strided_slice %98 {offsets = [0, 32], sizes = [16, 16], strides = [1, 1]} : vector<16x48xf32> to vector<16x16xf32>
      %104 = arith.truncf %103 : vector<16x16xf32> to vector<16x16xbf16>
      %cst_49 = arith.constant dense<0.000000e+00> : vector<16x16xf32>
      %105 = tpu.matmul %100, %102, %cst_49 {dimension_numbers = #tpu.dot_dimension_numbers<[1], [1], [0], [0], [0, 0, 1, 0], [], []>} : vector<16x16xbf16>, vector<16x16xbf16>, vector<16x16xf32> -> vector<16x16xf32>
      %cst_50 = arith.constant 2.500000e-01 : f32
      %106 = vector.broadcast %cst_50 : f32 to vector<16x16xf32>
      %107 = arith.mulf %105, %106 : vector<16x16xf32>
      %cst_51 = arith.constant dense<0xFF800000> : vector<16xf32>
      %108 = vector.multi_reduction <maximumf>, %107, %cst_51 [1] : vector<16x16xf32> to vector<16xf32>
      %109 = vector.shape_cast %108 : vector<16xf32> to vector<16x1xf32>
      %110 = vector.broadcast %109 : vector<16x1xf32> to vector<16x16xf32>
      %111 = arith.subf %107, %110 : vector<16x16xf32>
      %112 = math.exp %111 : vector<16x16xf32>
      %cst_52 = arith.constant dense<0.000000e+00> : vector<16xf32>
      %113 = vector.multi_reduction <add>, %112, %cst_52 [1] : vector<16x16xf32> to vector<16xf32>
      %114 = vector.shape_cast %113 : vector<16xf32> to vector<16x1xf32>
      %115 = tpu.reciprocal %114 {approx = true} : vector<16x1xf32> -> vector<16x1xf32>
      %116 = vector.broadcast %115 : vector<16x1xf32> to vector<16x16xf32>
      %117 = arith.mulf %112, %116 : vector<16x16xf32>
      %118 = arith.truncf %117 : vector<16x16xf32> to vector<16x16xbf16>
      %cst_53 = arith.constant dense<0.000000e+00> : vector<16x16xf32>
      %119 = tpu.matmul %118, %104, %cst_53 {dimension_numbers = #tpu.dot_dimension_numbers<[1], [0], [0], [1], [0, 0, 1, 1], [], []>} : vector<16x16xbf16>, vector<16x16xbf16>, vector<16x16xf32> -> vector<16x16xf32>
      %120 = arith.truncf %119 : vector<16x16xf32> to vector<16x16xbf16>
      %121 = vector.extract_strided_slice %71 {offsets = [16, 0], sizes = [16, 32], strides = [1, 1]} : vector<32x32xbf16> to vector<16x32xbf16>
      %cst_54 = arith.constant dense<0.000000e+00> : vector<16x32xf32>
      %122 = tpu.matmul %120, %121, %cst_54 {dimension_numbers = #tpu.dot_dimension_numbers<[1], [0], [0], [1], [0, 0, 1, 1], [], []>} : vector<16x16xbf16>, vector<16x32xbf16>, vector<16x32xf32> -> vector<16x32xf32>
      %c16 = arith.constant 16 : index
      %c0_55 = arith.constant 0 : index
      %123 = vector.load %arg16[%c16, %c0_55] : memref<32x32xf32, #tpu.memory_space<vmem>>, vector<16x32xf32>
      tpu.vector_store %arg16[%c16, %c0_55], %122 {strides = array<i32>} : memref<32x32xf32, #tpu.memory_space<vmem>>, vector<16x32xf32>,
    } else {
    }
    %c1_i32_29 = arith.constant 1 : i32
    %58 = arith.cmpi eq, %arg1, %c1_i32_29 : i32
    %59 = arith.extui %58 : i1 to i32
    %c0_i32_30 = arith.constant 0 : i32
    %60 = arith.cmpi ne, %59, %c0_i32_30 : i32
    scf.if %60 {
      %61 = arith.truncf %25 : vector<64x16xf32> to vector<64x16xbf16>
      %62 = arith.truncf %44 : vector<64x16xf32> to vector<64x16xbf16>
      %63 = tpu.concatenate %61, %62 in 1 : vector<64x16xbf16>, vector<64x16xbf16> -> vector<64x32xbf16>
      %c0_31 = arith.constant 0 : index
      %c0_32 = arith.constant 0 : index
      %64 = vector.load %arg16[%c0_31, %c0_32] : memref<32x32xf32, #tpu.memory_space<vmem>>, vector<32x32xf32>
      %65 = arith.truncf %64 : vector<32x32xf32> to vector<32x32xbf16>
      %cst_33 = arith.constant dense<0.000000e+00> : vector<64x32xf32>
      %66 = tpu.matmul %63, %65, %cst_33 {dimension_numbers = #tpu.dot_dimension_numbers<[1], [0], [0], [1], [0, 0, 1, 1], [], []>} : vector<64x32xbf16>, vector<32x32xbf16>, vector<64x32xf32> -> vector<64x32xf32>
      %c0_34 = arith.constant 0 : index
      %c0_35 = arith.constant 0 : index
      %67 = vector.load %arg12[%c0_34, %c0_35] : memref<1x32xf32, #tpu.memory_space<vmem>>, vector<1x32xf32>
      %68 = vector.broadcast %67 : vector<1x32xf32> to vector<64x32xf32>
      %69 = arith.addf %66, %68 : vector<64x32xf32>
      %c0_36 = arith.constant 0 : index
      %c0_37 = arith.constant 0 : index
      %c0_38 = arith.constant 0 : index
      %70 = vector.load %arg13[%c0_36, %c0_37, %c0_38] : memref<1x64x32xf32, #tpu.memory_space<vmem>>, vector<1x64x32xf32>
      %71 = vector.shape_cast %70 : vector<1x64x32xf32> to vector<64x32xf32>
      %72 = vector.shape_cast %69 : vector<64x32xf32> to vector<1x64x32xf32>
      tpu.vector_store %arg13[%c0_36, %c0_37, %c0_38], %72 {strides = array<i32>} : memref<1x64x32xf32, #tpu.memory_space<vmem>>, vector<1x64x32xf32>,
    } else {
    }
    return
  }
  func.func @transform_0(%arg0: i32, %arg1: i32, %arg2: i32) -> (i32, i32, i32) {
    %c0_i32 = arith.constant 0 : i32
    %c0_i32_0 = arith.constant 0 : i32
    return %arg0, %arg2, %c0_i32 : i32, i32, i32
  }
  func.func @transform_1(%arg0: i32, %arg1: i32, %arg2: i32) -> (i32, i32) {
    %c0_i32 = arith.constant 0 : i32
    %c0_i32_0 = arith.constant 0 : i32
    %c0_i32_1 = arith.constant 0 : i32
    return %c0_i32, %c0_i32_0 : i32, i32
  }
  func.func @transform_2(%arg0: i32, %arg1: i32, %arg2: i32) -> (i32, i32) {
    %c0_i32 = arith.constant 0 : i32
    %c0_i32_0 = arith.constant 0 : i32
    %c0_i32_1 = arith.constant 0 : i32
    return %c0_i32, %c0_i32_0 : i32, i32
  }
  func.func @transform_3(%arg0: i32, %arg1: i32, %arg2: i32) -> (i32, i32) {
    %c0_i32 = arith.constant 0 : i32
    %c0_i32_0 = arith.constant 0 : i32
    %c0_i32_1 = arith.constant 0 : i32
    return %c0_i32, %c0_i32_0 : i32, i32
  }
  func.func @transform_4(%arg0: i32, %arg1: i32, %arg2: i32) -> (i32, i32) {
    %c0_i32 = arith.constant 0 : i32
    %c0_i32_0 = arith.constant 0 : i32
    %c0_i32_1 = arith.constant 0 : i32
    return %c0_i32, %c0_i32_0 : i32, i32
  }
  func.func @transform_5(%arg0: i32, %arg1: i32, %arg2: i32) -> (i32, i32, i32) {
    %c0_i32 = arith.constant 0 : i32
    %c0_i32_0 = arith.constant 0 : i32
    %c0_i32_1 = arith.constant 0 : i32
    %c0_i32_2 = arith.constant 0 : i32
    return %c0_i32, %c0_i32_0, %c0_i32_1 : i32, i32, i32
  }
  func.func @transform_6(%arg0: i32, %arg1: i32, %arg2: i32) -> (i32, i32, i32) {
    %c0_i32 = arith.constant 0 : i32
    %c0_i32_0 = arith.constant 0 : i32
    %c0_i32_1 = arith.constant 0 : i32
    %c0_i32_2 = arith.constant 0 : i32
    return %c0_i32, %c0_i32_0, %c0_i32_1 : i32, i32, i32
  }
  func.func @transform_7(%arg0: i32, %arg1: i32, %arg2: i32) -> (i32, i32) {
    %c0_i32 = arith.constant 0 : i32
    %c0_i32_0 = arith.constant 0 : i32
    %c0_i32_1 = arith.constant 0 : i32
    return %c0_i32, %c0_i32_0 : i32, i32
  }
  func.func @transform_8(%arg0: i32, %arg1: i32, %arg2: i32) -> (i32, i32) {
    %c0_i32 = arith.constant 0 : i32
    %c0_i32_0 = arith.constant 0 : i32
    %c0_i32_1 = arith.constant 0 : i32
    return %c0_i32, %c0_i32_0 : i32, i32
  }
  func.func @transform_9(%arg0: i32, %arg1: i32, %arg2: i32) -> (i32, i32) {
    %c0_i32 = arith.constant 0 : i32
    %c0_i32_0 = arith.constant 0 : i32
    %c0_i32_1 = arith.constant 0 : i32
    return %c0_i32, %c0_i32_0 : i32, i32
  }
  func.func @transform_10(%arg0: i32, %arg1: i32, %arg2: i32) -> (i32, i32, i32) {
    %0 = arith.muli %arg1, %arg2 : i32
    %c0_i32 = arith.constant 0 : i32
    %c0_i32_0 = arith.constant 0 : i32
    return %arg0, %0, %c0_i32 : i32, i32, i32
  }
}

</mosaic_0001>

<bundles_post_ra>
// kernel: tpu_custom_call.1
= control target key start
LH: loop header
LB: loop body
LE: loop exit
PB: predicated region body
PF: predicated region fallthrough
CT: control target
= control target key end

     0   :  { %s2524_s13 = smov 0   ;;  %s2526_s14 = smov 0   ;;  %s3004_s0 = inlined_call_operand.vmem [shape: bf16[2,64,32], index: 0, kind: input, shape index: {}]   ;;  %s3005_s1 = inlined_call_operand.vmem [shape: bf16[32,32], index: 1, kind: input, shape index: {}]   ;;  %s3006_s2 = inlined_call_operand.vmem [shape: f32[1,32], index: 2, kind: input, shape index: {}]   ;;  %s3007_s3 = inlined_call_operand.vmem [shape: bf16[32,32], index: 3, kind: input, shape index: {}]   ;;  %s3008_s4 = inlined_call_operand.vmem [shape: f32[1,32], index: 4, kind: input, shape index: {}]   ;;  %s3009_s5 = inlined_call_operand.vmem [shape: bf16[2,16,16], index: 5, kind: input, shape index: {}]   ;;  %s3010_s6 = inlined_call_operand.vmem [shape: f32[2,1,16], index: 6, kind: input, shape index: {}]   ;;  %s3011_s7 = inlined_call_operand.vmem [shape: bf16[16,48], index: 7, kind: input, shape index: {}]   ;;  %s3012_s8 = inlined_call_operand.vmem [shape: bf16[32,32], index: 8, kind: input, shape index: {}]   ;;  %s3013_s9 = inlined_call_operand.vmem [shape: f32[1,32], index: 9, kind: input, shape index: {}]   ;;  %s3014_s10 = inlined_call_operand.vmem [shape: f32[2,64,32], index: 10, kind: output, shape index: {}]  }
   0x1   :  { %s2528_s15 = smov 0   ;;  %s2530_s16 = smov 0  }
   0x2   :  { %s2532_s17 = smov 0  }
   0x3 LB: > { %s35_s18 = sadd.s32 1, %s2447_s15  ;;  %s39_s19 = sadd.s32 1, %s2451_s16  ;;  %s2455_s17 = sphi %s2532_s17, %s20_s17   ;;  %s2451_s16 = sphi %s2530_s16, %s3018_s16   ;;  %s2447_s15 = sphi %s2528_s15, %s3017_s15   ;;  %s2443_s14 = sphi %s2526_s14, %s3016_s14   ;;  %s2439_s13 = sphi %s2524_s13, %s3015_s13  }
   0x4   : > { %p37_p0 = scmp.ge.s32.totalorder %s35_s18, 2  ;;  %p1978_p1 = scmp.ge.s32.totalorder %s2455_s17, 1 }
   0x5   : > { %p342_p2 = scmp.lt.s32.totalorder %s2455_s17, 5 }
   0x6   : > { %s3020_s18 = smov (%p37_p0, %s35_s18), 0  ;;  %s3022_s19 = smov (!%p37_p0, %s39_s19), %s2451_s16 }
   0x7   : > { %p343_p3 = pnand %p1978_p1, %p342_p2  ;;  %p41_p4 = scmp.ge.s32.totalorder %s3022_s19, 2 }
   0x8   : > { %v2314_v0 = vld [vmem:[%s3007_s3] sm:$0xff] (!%p343_p3)   ;;  %p390_p5 = scmp.lt.s32.totalorder (!%p343_p3), %s2443_s14, 1  ;;  %v2315_v1 = vld [vmem:[%s3007_s3 + $0x8] sm:$0xff] (!%p343_p3)   ;;  %vm464_vm0 = vcmask (!%p343_p3), 261120   ;;  %vm561_vm1 = vcmask (!%p343_p3), 130048   ;;  %p921_p6 = scmp.eq.s32.totalorder (!%p343_p3), %s2439_s13, 0 }
   0x9   : > { %s3024_s19 = smov (%p41_p4, %s3022_s19), 0  ;;  %346 = sbr.rel (%p343_p3) target bundleno = 3841 (0xf01), region = 60 }
   0xa   : > { %2109 = vmatprep.subr.bf16.mxu0 (!%p343_p3), %v2314_v0  ;;  %v2320_v6 = vld [vmem:[%s3009_s5] sm:$0xff] (!%p343_p3)   ;;  %v2321_v7 = vld [vmem:[%s3009_s5 + $0x8] sm:$0xff] (!%p343_p3)  }
   0xb   : > { %2110 = vmatpush3.bf16.msra.mxu0 (!%p343_p3), %v2314_v0  ;;  %2255 = vmatprep.subr.bf16.mxu1 (!%p343_p3), %v2320_v6  ;;  %v1983_v9 = vld [vmem:[%s3008_s4] ss:$0 sm:$0xff] (!%p343_p3)  ;;  %v2003_v58 = vld [vmem:[%s3010_s6 + $0x1] ss:$0 sm:$0xff] (!%p343_p3) }
   0xc   : > { %2111 = vmatprep.subr.bf16.mxu0 (!%p343_p3), %v2315_v1  ;;  %2256 = vmatpush3.bf16.msra.mxu1 (!%p343_p3), %v2320_v6  ;;  %v1994_v33 = vld [vmem:[%s3010_s6] ss:$0 sm:$0xff] (!%p343_p3) }
   0xd   : > { %2131 = vmatprep.subr.bf16.mxu1 (!%p343_p3), %v2321_v7 }
   0xf   : > { %2112 = vmatpush3.bf16.msra.mxu0 (!%p343_p3), %v2315_v1 }
  0x10   : > { %s3026_s14 = smov (!%p390_p5, %s2443_s14), 1  ;;  %2121 = vmatprep.subr.bf16.mxu0 %v2320_v6  ;;  %vm931_vm2 = vcmask (%p921_p6), 7168  }
  0x11   : > { %s2042_s24 = sshll.u32 %s3026_s14, 5  ;;  %s2043_s25 = sshll.u32 %s3026_s14, 6 }
  0x12   : > { %s397_s28 = scalar_lea.vmem %s3004_s0, %s2042_s24  ;;  %s2568_s11 = scalar_lea.vmem %s3014_s10, %s2043_s25 }
  0x13   : > { %v2570_v2 = vld [vmem:[%s397_s28] sm:$0xff]   ;;  %v2572_v3 = vld [vmem:[%s397_s28 + $0x8] sm:$0xff]   ;;  %v2576_v4 = vld [vmem:[%s397_s28 + $0x10] sm:$0xff]   ;;  %s2457_s24 = smov 112  }
  0x14   : > { %2113 = vmatprep.mubr.msk.bf16.mxu0 %vm464_vm0, %v2570_v2  ;;  %v2582_v5 = vld [vmem:[%s397_s28 + $0x18] sm:$0xff]  }
  0x15   : > { %2114 = vmatmul.mubr.msk.bf16.vlgmr.msra.gmra.mrb[0].mxu0 %vm464_vm0, %v2572_v3 }
  0x16   : > { %2117 = vmatprep.mubr.msk.bf16.mxu0 %vm464_vm0, %v2576_v4  ;;  %2122 = vmatpush3.bf16.msra.mxu0 %v2320_v6 }
  0x1d   : > { %2118 = vmatmul.mubr.msk.bf16.gmra.mrb[4].mxu0 %vm464_vm0, %v2582_v5 }
  0xe8   : > { %v2115_v8 = vpop.f32.mrb[0].mxu0 }
  0xe9   : > { %v511_v10 = vpop.f32.mrb[1].mxu0  ;;  %v520_v12 = vadd.f32 %v2115_v8, %v1983_v9 }
  0xea   : > { %v2116_v11 = vpop.f32.mrb[2].mxu0  ;;  %v512_v15 = vadd.f32 %v1983_v9, %v511_v10 }
  0xeb   : > { %v523_v13 = vadd.f32 %v2116_v11, %v1983_v9  ;;  %v514_v14 = vpop.f32.mrb[3].mxu0 }
  0xec   : > { %v515_v16 = vadd.f32 %v1983_v9, %v514_v14 }
  0xed   : > { %v543_v17 = vpack.c.bf16 %v523_v13, %v520_v12 }
  0xee   : > { %v542_v18 = vpack.c.bf16 %v515_v16, %v512_v15 }
  0xf0   : > { %v2119_v19 = vpop.f32.mrb[4].mxu0  ;;  %742 = vrot.lane.b32.xlu0 %v542_v18, %s2457_s24  ;;  %2123 = vmatprep.mubr.msk.bf16.mxu0 %vm561_vm1, %v542_v18 }
  0xf1   : > { %v527_v20 = vpop.f32.mrb[5].mxu0  ;;  %2124 = vmatmul.mubr.msk.bf16.vlgmr.msra.gmra.mrb[8].mxu0 %vm561_vm1, %v543_v17  ;;  %v536_v22 = vadd.f32 %v2119_v19, %v1983_v9 }
  0xf2   : > { %v2120_v21 = vpop.f32.mrb[6].mxu0  ;;  %v528_v25 = vadd.f32 %v1983_v9, %v527_v20 }
  0xf3   : > { %v539_v23 = vadd.f32 %v2120_v21, %v1983_v9  ;;  %v530_v24 = vpop.f32.mrb[7].mxu0 }
  0xf4   : > { %v531_v26 = vadd.f32 %v1983_v9, %v530_v24  ;;  %744 = vrot.lane.b32.xlu0 %v543_v17, %s2457_s24 }
  0xf5   : > { %v545_v27 = vpack.c.bf16 %v539_v23, %v536_v22 }
  0xf6   : > { %v544_v28 = vpack.c.bf16 %v531_v26, %v528_v25 }
  0xf8   : > { %746 = vrot.lane.b32.xlu1 %v544_v28, %s2457_s24  ;;  %2127 = vmatprep.mubr.msk.bf16.mxu1 %vm561_vm1, %v544_v28 }
  0xf9   : > { %2128 = vmatmul.mubr.msk.bf16.vlgmr.msra.gmra.mrb[0].mxu1 %vm561_vm1, %v545_v27 }
  0xfa   : > { %2132 = vmatpush3.bf16.msra.mxu1 %v2321_v7 }
  0xfc   : > { %748 = vrot.lane.b32.xlu1 %v545_v27, %s2457_s24 }
 0x162   : > { %v743_v29 = vpop.permute.xlu0 %742 }
 0x163   : > { %2133 = vmatprep.mubr.msk.bf16.mxu1 %vm561_vm1, %v743_v29 }
 0x166   : > { %v745_v30 = vpop.permute.xlu0 %744 }
 0x167   : > { %2134 = vmatmul.mubr.msk.bf16.vlgmr.msra.gmra.mrb[4].mxu1 %vm561_vm1, %v745_v30 }
 0x16a   : > { %v747_v31 = vpop.permute.xlu1 %746 }
 0x16b   : > { %2137 = vmatprep.mubr.msk.bf16.mxu1 %vm561_vm1, %v747_v31 }
 0x16e   : > { %v749_v32 = vpop.permute.xlu1 %748 }
 0x16f   : > { %2138 = vmatmul.mubr.msk.bf16.gmra.mrb[8].mxu1 %vm561_vm1, %v749_v32 }
 0x1c4   : > { %v2125_v34 = vpop.f32.mrb[8].mxu0 }
 0x1c5   : > { %v2606_v35 = vadd.f32 %v2125_v34, %v1994_v33  ;;  %v608_v36 = vpop.f32.mrb[9].mxu0 }
 0x1c6   : > { %v2126_v37 = vpop.f32.mrb[10].mxu0  ;;  %v2608_v38 = vadd.f32 %v1994_v33, %v608_v36 }
 0x1c7   : > { %v611_v39 = vpop.f32.mrb[11].mxu0  ;;  %v645_v40 = vsel %vm561_vm1, %v2606_v35, -inf  ;;  %v2616_v43 = vadd.f32 %v2126_v37, %v1994_v33 }
 0x1c8   : > { %v2612_v41 = vadd.f32 %v1994_v33, %v611_v39  ;;  %646 = vmax.xlane.f32.xlu0 %v645_v40  ;;  %v639_v44 = vsel %vm561_vm1, %v2608_v38, -inf }
 0x1c9   : > { %v648_v53 = vsel %vm561_vm1, %v2616_v43, -inf }
 0x1ca   : > { %v642_v42 = vsel %vm561_vm1, %v2612_v41, -inf }
 0x1cb   : > { %643 = vmax.xlane.f32.xlu1 %v642_v42 }
 0x1cc   : > { %v2129_v45 = vpop.f32.mrb[0].mxu1  ;;  %640 = vmax.xlane.f32.xlu0 %v639_v44 }
 0x1cd   : > { %v2620_v46 = vadd.f32 %v2129_v45, %v1994_v33  ;;  %v624_v47 = vpop.f32.mrb[1].mxu1 }
 0x1ce   : > { %v2130_v48 = vpop.f32.mrb[2].mxu1  ;;  %v2622_v49 = vadd.f32 %v1994_v33, %v624_v47 }
 0x1cf   : > { %v2624_v50 = vadd.f32 %v2130_v48, %v1994_v33  ;;  %v627_v51 = vpop.f32.mrb[3].mxu1  ;;  %v657_v52 = vsel %vm561_vm1, %v2620_v46, -inf }
 0x1d0   : > { %658 = vmax.xlane.f32.xlu1 %v657_v52  ;;  %649 = vmax.xlane.f32.xlu0 %v648_v53  ;;  %v2630_v54 = vadd.f32 %v1994_v33, %v627_v51  ;;  %v651_v55 = vsel %vm561_vm1, %v2622_v49, -inf }
 0x1d1   : > { %v660_v56 = vsel %vm561_vm1, %v2624_v50, -inf }
 0x1d2   : > { %v654_v57 = vsel %vm561_vm1, %v2630_v54, -inf }
 0x1d4   : > { %652 = vmax.xlane.f32.xlu1 %v651_v55  ;;  %661 = vmax.xlane.f32.xlu0 %v660_v56 }
 0x1d8   : > { %655 = vmax.xlane.f32.xlu0 %v654_v57 }
 0x23a   : > { %v2135_v59 = vpop.f32.mrb[4].mxu1 }
 0x23b   : > { %v2641_v60 = vadd.f32 %v2135_v59, %v2003_v58  ;;  %v802_v61 = vpop.f32.mrb[5].mxu1 }
 0x23c   : > { %v2136_v62 = vpop.f32.mrb[6].mxu1  ;;  %v2643_v63 = vadd.f32 %v2003_v58, %v802_v61 }
 0x23d   : > { %v2645_v0 = vadd.f32 %v2136_v62, %v2003_v58  ;;  %v805_v1 = vpop.f32.mrb[7].mxu1  ;;  %v839_v6 = vsel %vm561_vm1, %v2641_v60, -inf }
 0x23e   : > { %840 = vmax.xlane.f32.xlu1 %v839_v6  ;;  %v2649_v7 = vadd.f32 %v2003_v58, %v805_v1  ;;  %v833_v9 = vsel %vm561_vm1, %v2643_v63, -inf }
 0x23f   : > { %v842_v8 = vsel %vm561_vm1, %v2645_v0, -inf }
 0x240   : > { %843 = vmax.xlane.f32.xlu0 %v842_v8  ;;  %v836_v12 = vsel %vm561_vm1, %v2649_v7, -inf }
 0x242   : > { %v2139_v10 = vpop.f32.mrb[8].mxu1  ;;  %834 = vmax.xlane.f32.xlu1 %v833_v9 }
 0x243   : > { %v818_v11 = vpop.f32.mrb[9].mxu1  ;;  %v2659_v16 = vadd.f32 %v2139_v10, %v2003_v58 }
 0x244   : > { %v2657_v13 = vadd.f32 %v2003_v58, %v818_v11  ;;  %v2140_v14 = vpop.f32.mrb[10].mxu1  ;;  %837 = vmax.xlane.f32.xlu0 %v836_v12 }
 0x245   : > { %v821_v15 = vpop.f32.mrb[11].mxu1  ;;  %v2665_v19 = vadd.f32 %v2140_v14, %v2003_v58  ;;  %v851_v21 = vsel %vm561_vm1, %v2659_v16, -inf }
 0x246   : > { %v2661_v17 = vadd.f32 %v2003_v58, %v821_v15  ;;  %v845_v18 = vsel %vm561_vm1, %v2657_v13, -inf }
 0x247   : > { %846 = vmax.xlane.f32.xlu1 %v845_v18  ;;  %v854_v22 = vsel %vm561_vm1, %v2665_v19, -inf }
 0x248   : > { %v848_v20 = vsel %vm561_vm1, %v2661_v17, -inf }
 0x249   : > { %849 = vmax.xlane.f32.xlu0 %v848_v20 }
 0x24b   : > { %852 = vmax.xlane.f32.xlu1 %v851_v21 }
 0x24d   : > { %855 = vmax.xlane.f32.xlu0 %v854_v22 }
 0x255   : > { %v647_v23 = vpop.xlane.xlu0 %646 }
 0x256   : > { %v665_v24 = vsub.f32 %v2606_v35, %v647_v23 }
 0x258   : > { %v675_v25 = vmul.f32 1.442695, %v665_v24  ;;  %v644_v26 = vpop.xlane.xlu1 %643 }
 0x259   : > { %v641_v27 = vpop.xlane.xlu0 %640  ;;  %v664_v30 = vsub.f32 %v2612_v41, %v644_v26 }
 0x25a   : > { %2322 = vpow2.f32 %v675_v25  ;;  %v663_v28 = vsub.f32 %v2608_v38, %v641_v27 }
 0x25b   : > { %v673_v39 = vmul.f32 1.442695, %v664_v30 }
 0x25c   : > { %v671_v29 = vmul.f32 1.442695, %v663_v28 }
 0x25d   : > { %v659_v31 = vpop.xlane.xlu1 %658  ;;  %v650_v32 = vpop.xlane.xlu0 %649 }
 0x25e   : > { %2324 = vpow2.f32 %v671_v29  ;;  %v669_v33 = vsub.f32 %v2620_v46, %v659_v31  ;;  %v666_v34 = vsub.f32 %v2616_v43, %v650_v32 }
 0x260   : > { %v683_v36 = vmul.f32 1.442695, %v669_v33  ;;  %v677_v37 = vmul.f32 1.442695, %v666_v34 }
 0x261   : > { %v653_v35 = vpop.xlane.xlu1 %652  ;;  %v662_v40 = vpop.xlane.xlu0 %661 }
 0x262   : > { %2326 = vpow2.f32 %v683_v36  ;;  %v667_v42 = vsub.f32 %v2622_v49, %v653_v35  ;;  %v670_v38 = vsub.f32 %v2624_v50, %v662_v40 }
 0x263   : > { %2328 = vpow2.f32 %v677_v37 }
 0x264   : > { %v2680_v44 = vpop.eup %2322  ;;  %v679_v41 = vmul.f32 1.442695, %v667_v42  ;;  %2330 = vpow2.f32 %v673_v39  ;;  %v685_v45 = vmul.f32 1.442695, %v670_v38 }
 0x265   : > { %v656_v47 = vpop.xlane.xlu0 %655  ;;  %v693_v43 = vsel %vm561_vm1, %v2680_v44, 0.0 }
 0x266   : > { %2332 = vpow2.f32 %v679_v41  ;;  %v668_v46 = vsub.f32 %v2630_v54, %v656_v47  ;;  %694 = vadd.xlane.f32.xlu1 %v693_v43 }
 0x267   : > { %2334 = vpow2.f32 %v685_v45 }
 0x268   : > { %v2685_v48 = vpop.eup %2324  ;;  %v681_v49 = vmul.f32 1.442695, %v668_v46 }
 0x269   : > { %v687_v50 = vsel %vm561_vm1, %v2685_v48, 0.0 }
 0x26a   : > { %688 = vadd.xlane.f32.xlu1 %v687_v50  ;;  %2336 = vpow2.f32 %v681_v49 }
 0x26c   : > { %v2689_v51 = vpop.eup %2326 }
 0x26d   : > { %v2691_v52 = vpop.eup %2328  ;;  %v705_v53 = vsel %vm561_vm1, %v2689_v51, 0.0 }
 0x26e   : > { %706 = vadd.xlane.f32.xlu1 %v705_v53  ;;  %v696_v54 = vsel %vm561_vm1, %v2691_v52, 0.0  ;;  %v2697_v55 = vpop.eup %2330 }
 0x26f   : > { %697 = vadd.xlane.f32.xlu0 %v696_v54  ;;  %v690_v58 = vsel %vm561_vm1, %v2697_v55, 0.0 }
 0x270   : > { %v2699_v56 = vpop.eup %2332 }
 0x271   : > { %v699_v57 = vsel %vm561_vm1, %v2699_v56, 0.0  ;;  %v2705_v59 = vpop.eup %2334 }
 0x272   : > { %700 = vadd.xlane.f32.xlu1 %v699_v57  ;;  %v708_v61 = vsel %vm561_vm1, %v2705_v59, 0.0 }
 0x273   : > { %691 = vadd.xlane.f32.xlu0 %v690_v58 }
 0x274   : > { %v2709_v62 = vpop.eup %2336 }
 0x275   : > { %v702_v1 = vsel %vm561_vm1, %v2709_v62, 0.0 }
 0x277   : > { %709 = vadd.xlane.f32.xlu0 %v708_v61 }
 0x27b   : > { %703 = vadd.xlane.f32.xlu0 %v702_v1 }
 0x2cb   : > { %v841_v6 = vpop.xlane.xlu1 %840 }
 0x2cc   : > { %v859_v8 = vsub.f32 %v2641_v60, %v841_v6 }
 0x2cd   : > { %v844_v9 = vpop.xlane.xlu0 %843 }
 0x2ce   : > { %v869_v10 = vmul.f32 1.442695, %v859_v8  ;;  %v860_v11 = vsub.f32 %v2645_v0, %v844_v9 }
 0x2cf   : > { %v835_v12 = vpop.xlane.xlu1 %834 }
 0x2d0   : > { %2338 = vpow2.f32 %v869_v10  ;;  %v871_v14 = vmul.f32 1.442695, %v860_v11  ;;  %v857_v15 = vsub.f32 %v2643_v63, %v835_v12 }
 0x2d1   : > { %v838_v18 = vpop.xlane.xlu0 %837 }
 0x2d2   : > { %2340 = vpow2.f32 %v871_v14  ;;  %v865_v20 = vmul.f32 1.442695, %v857_v15  ;;  %v858_v21 = vsub.f32 %v2649_v7, %v838_v18 }
 0x2d4   : > { %2342 = vpow2.f32 %v865_v20  ;;  %v867_v22 = vmul.f32 1.442695, %v858_v21  ;;  %v847_v23 = vpop.xlane.xlu1 %846 }
 0x2d5   : > { %v861_v24 = vsub.f32 %v2657_v13, %v847_v23 }
 0x2d6   : > { %2344 = vpow2.f32 %v867_v22  ;;  %v850_v60 = vpop.xlane.xlu0 %849 }
 0x2d7   : > { %v873_v25 = vmul.f32 1.442695, %v861_v24  ;;  %v862_v0 = vsub.f32 %v2661_v17, %v850_v60 }
 0x2d8   : > { %v853_v26 = vpop.xlane.xlu1 %852 }
 0x2d9   : > { %2346 = vpow2.f32 %v873_v25  ;;  %v875_v27 = vmul.f32 1.442695, %v862_v0  ;;  %v863_v63 = vsub.f32 %v2659_v16, %v853_v26 }
 0x2da   : > { %v2720_v28 = vpop.eup %2338  ;;  %v856_v29 = vpop.xlane.xlu0 %855 }
 0x2db   : > { %2348 = vpow2.f32 %v875_v27  ;;  %v877_v7 = vmul.f32 1.442695, %v863_v63  ;;  %v864_v30 = vsub.f32 %v2665_v19, %v856_v29  ;;  %v887_v13 = vsel %vm561_vm1, %v2720_v28, 0.0 }
 0x2dc   : > { %v2725_v31 = vpop.eup %2340  ;;  %888 = vadd.xlane.f32.xlu1 %v887_v13 }
 0x2dd   : > { %2350 = vpow2.f32 %v877_v7  ;;  %v879_v17 = vmul.f32 1.442695, %v864_v30  ;;  %v890_v32 = vsel %vm561_vm1, %v2725_v31, 0.0 }
 0x2de   : > { %v2729_v33 = vpop.eup %2342  ;;  %891 = vadd.xlane.f32.xlu0 %v890_v32 }
 0x2df   : > { %2352 = vpow2.f32 %v879_v17  ;;  %v881_v16 = vsel %vm561_vm1, %v2729_v33, 0.0 }
 0x2e0   : > { %v2733_v34 = vpop.eup %2344  ;;  %882 = vadd.xlane.f32.xlu1 %v881_v16 }
 0x2e1   : > { %v884_v19 = vsel %vm561_vm1, %v2733_v34, 0.0 }
 0x2e2   : > { %885 = vadd.xlane.f32.xlu0 %v884_v19 }
 0x2e3   : > { %v2737_v36 = vpop.eup %2346 }
 0x2e4   : > { %v893_v37 = vsel %vm561_vm1, %v2737_v36, 0.0 }
 0x2e5   : > { %v2741_v39 = vpop.eup %2348  ;;  %894 = vadd.xlane.f32.xlu1 %v893_v37 }
 0x2e6   : > { %v896_v35 = vsel %vm561_vm1, %v2741_v39, 0.0 }
 0x2e7   : > { %v2745_v40 = vpop.eup %2350  ;;  %897 = vadd.xlane.f32.xlu0 %v896_v35 }
 0x2e8   : > { %v899_v42 = vsel %vm561_vm1, %v2745_v40, 0.0 }
 0x2e9   : > { %v2749_v38 = vpop.eup %2352  ;;  %900 = vadd.xlane.f32.xlu1 %v899_v42 }
 0x2ea   : > { %v902_v41 = vsel %vm561_vm1, %v2749_v38, 0.0 }
 0x2eb   : > { %903 = vadd.xlane.f32.xlu0 %v902_v41 }
 0x2f3   : > { %v695_v45 = vpop.xlane.xlu1 %694 }
 0x2f4   : > { %2354 = vrcp.f32 %v695_v45 }
 0x2f7   : > { %v689_v47 = vpop.xlane.xlu1 %688 }
 0x2f8   : > { %2356 = vrcp.f32 %v689_v47 }
 0x2fb   : > { %v707_v43 = vpop.xlane.xlu1 %706 }
 0x2fc   : > { %2358 = vrcp.f32 %v707_v43  ;;  %v698_v46 = vpop.xlane.xlu0 %697 }
 0x2fd   : > { %2360 = vrcp.f32 %v698_v46 }
 0x2fe   : > { %v2355_v49 = vpop.eup %2354 }
 0x2ff   : > { %v2754_v50 = vmul.f32 %v2355_v49, %v2680_v44  ;;  %v701_v53 = vpop.xlane.xlu1 %700 }
 0x300   : > { %2362 = vrcp.f32 %v701_v53  ;;  %v692_v54 = vpop.xlane.xlu0 %691 }
 0x301   : > { %2364 = vrcp.f32 %v692_v54 }
 0x302   : > { %v2357_v57 = vpop.eup %2356 }
 0x303   : > { %v2757_v58 = vmul.f32 %v2357_v57, %v2685_v48 }
 0x304   : > { %v710_v61 = vpop.xlane.xlu0 %709 }
 0x305   : > { %2366 = vrcp.f32 %v710_v61 }
 0x306   : > { %v2359_v1 = vpop.eup %2358 }
 0x307   : > { %v2361_v6 = vpop.eup %2360  ;;  %v2761_v8 = vmul.f32 %v2359_v1, %v2689_v51 }
 0x308   : > { %v2764_v9 = vmul.f32 %v2361_v6, %v2691_v52  ;;  %v704_v44 = vpop.xlane.xlu0 %703 }
 0x309   : > { %2368 = vrcp.f32 %v704_v44 }
 0x30a   : > { %v2363_v10 = vpop.eup %2362 }
 0x30b   : > { %v2365_v11 = vpop.eup %2364  ;;  %v2767_v12 = vmul.f32 %v2363_v10, %v2699_v56 }
 0x30c   : > { %v2770_v48 = vmul.f32 %v2365_v11, %v2697_v55 }
 0x30f   : > { %v2367_v14 = vpop.eup %2366 }
 0x310   : > { %v2773_v15 = vmul.f32 %v2367_v14, %v2705_v59 }
 0x313   : > { %v2369_v18 = vpop.eup %2368 }
 0x314   : > { %v2776_v51 = vmul.f32 %v2369_v18, %v2709_v62 }
 0x369   : > { %v889_v52 = vpop.xlane.xlu1 %888 }
 0x36a   : > { %2370 = vrcp.f32 %v889_v52 }
 0x36b   : > { %v892_v20 = vpop.xlane.xlu0 %891 }
 0x36c   : > { %2372 = vrcp.f32 %v892_v20 }
 0x36d   : > { %v883_v21 = vpop.xlane.xlu1 %882 }
 0x36e   : > { %2374 = vrcp.f32 %v883_v21 }
 0x36f   : > { %v886_v22 = vpop.xlane.xlu0 %885 }
 0x370   : > { %2376 = vrcp.f32 %v886_v22 }
 0x372   : > { %v895_v56 = vpop.xlane.xlu1 %894 }
 0x373   : > { %2378 = vrcp.f32 %v895_v56 }
 0x374   : > { %v2371_v55 = vpop.eup %2370  ;;  %v898_v23 = vpop.xlane.xlu0 %897 }
 0x375   : > { %v2779_v24 = vmul.f32 %v2371_v55, %v2720_v28  ;;  %2380 = vrcp.f32 %v898_v23 }
 0x376   : > { %v2373_v59 = vpop.eup %2372  ;;  %v901_v60 = vpop.xlane.xlu1 %900 }
 0x377   : > { %v2782_v62 = vmul.f32 %v2373_v59, %v2725_v31  ;;  %2382 = vrcp.f32 %v901_v60 }
 0x378   : > { %v2375_v25 = vpop.eup %2374  ;;  %v904_v0 = vpop.xlane.xlu0 %903 }
 0x379   : > { %v2785_v26 = vmul.f32 %v2375_v25, %v2729_v33  ;;  %2384 = vrcp.f32 %v904_v0  ;;  %v2458_v33 = vmov (%p921_p6), 0.0  }
 0x37a   : > { %v2377_v27 = vpop.eup %2376  ;;  %927 = vst.msk [vmem:[#allocation2] sm:$0xff] (%p921_p6), %vm561_vm1, %v2458_v33  ;;  %928 = vst.msk [vmem:[#allocation2 + $0x8] sm:$0xff] (%p921_p6), %vm561_vm1, %v2458_v33 }
 0x37b   : > { %v2788_v63 = vmul.f32 %v2377_v27, %v2733_v34  ;;  %929 = vst.msk [vmem:[#allocation2 + $0x10] sm:$0xff] (%p921_p6), %vm561_vm1, %v2458_v33  ;;  %930 = vst.msk [vmem:[#allocation2 + $0x18] sm:$0xff] (%p921_p6), %vm561_vm1, %v2458_v33 }
 0x37c   : > { %932 = vst.msk [vmem:[#allocation3] sm:$0xff] (%p921_p6), %vm931_vm2, %v2458_v33  ;;  %933 = vst.msk [vmem:[#allocation3 + $0x8] sm:$0xff] (%p921_p6), %vm931_vm2, %v2458_v33 }
 0x37d   : > { %v2379_v29 = vpop.eup %2378  ;;  %934 = vst.msk [vmem:[#allocation3 + $0x10] sm:$0xff] (%p921_p6), %vm931_vm2, %v2458_v33  ;;  %935 = vst.msk [vmem:[#allocation3 + $0x18] sm:$0xff] (%p921_p6), %vm931_vm2, %v2458_v33 }
 0x37e   : > { %v2791_v28 = vmul.f32 %v2379_v29, %v2737_v36  ;;  %926 = sbr.rel (!%p921_p6) target bundleno = 901 (0x385), region = 64 }
 0x37f   : > { %v2381_v7 = vpop.eup %2380 }
 0x380   : > { %v2794_v30 = vmul.f32 %v2381_v7, %v2741_v39 }
 0x381   : > { %v2383_v13 = vpop.eup %2382 }
 0x382   : > { %v2797_v31 = vmul.f32 %v2383_v13, %v2745_v40 }
 0x383   : > { %v2385_v17 = vpop.eup %2384 }
 0x384   : > { %v2800_v32 = vmul.f32 %v2385_v17, %v2749_v38 }
 0x385 PF: > { %p2010_p7 = scmp.ne.s32.totalorder %s2439_s13, 0 }
 0x386   : > { %v2386_v16 = vld [vmem:[%s3005_s1] sm:$0xff] (!%p2010_p7)   ;;  %2145 = vmatprep.mubr.msk.bf16.mxu0 (!%p2010_p7), %vm464_vm0, %v2570_v2  ;;  %v2387_v34 = vld [vmem:[%s3005_s1 + $0x8] sm:$0xff] (!%p2010_p7)   ;;  %v2459_v19 = vmov (!%p2010_p7), 0.0   ;;  %v2460_v2 = vmov (!%p2010_p7), 1065369472   ;;  %vm2461_vm3 = vmmov (!%p2010_p7), 0   ;;  %v1027_v6 = vpack.c.bf16 (!%p2010_p7), %v2770_v48, %v2757_v58 }
 0x387   : > { %938 = sbr.rel (%p2010_p7) target bundleno = 1500 (0x5dc), region = 68  ;;  %2141 = vmatprep.subr.bf16.mxu0 (!%p2010_p7), %v2386_v16  ;;  %2153 = vmatprep.subr.bf16.mxu1 (!%p2010_p7), %v2459_v19  ;;  %s2462_s22 = smov (!%p2010_p7), 112   ;;  %v1028_v44 = vpack.c.bf16 (!%p2010_p7), %v2764_v9, %v2754_v50  ;;  %v1029_v10 = vpack.c.bf16 (!%p2010_p7), %v2776_v51, %v2767_v12  ;;  %v1030_v11 = vpack.c.bf16 (!%p2010_p7), %v2773_v15, %v2761_v8  ;;  %vm1053_vm4 = vcmask (!%p2010_p7), 523264   ;;  %v1035_v60 = vld [vmem:[#allocation2] sm:$0xff] (!%p2010_p7)  ;;  %v1036_v29 = vld [vmem:[#allocation2 + $0x8] sm:$0xff] (!%p2010_p7) }
 0x388   : > { %2142 = vmatpush3.bf16.msra.mxu0 (!%p2010_p7), %v2386_v16  ;;  %2161 = vmatprep.mubr.msk.bf16.mxu1 (!%p2010_p7), %vm2461_vm3, %v2459_v19  ;;  %v1150_v14 = vpack.c.bf16 (!%p2010_p7), %v2788_v63, %v2785_v26  ;;  %v1151_v18 = vpack.c.bf16 (!%p2010_p7), %v2782_v62, %v2779_v24  ;;  %v1152_v52 = vpack.c.bf16 (!%p2010_p7), %v2794_v30, %v2791_v28  ;;  %v1102_v25 = vld [vmem:[#allocation3] sm:$0xff] (!%p2010_p7)  ;;  %vm1147_vm5 = vcmask (!%p2010_p7), 7168   ;;  %v1103_v7 = vld [vmem:[#allocation3 + $0x8] sm:$0xff] (!%p2010_p7) }
 0x389   : > { %2143 = vmatprep.subr.bf16.mxu0 (!%p2010_p7), %v2387_v34  ;;  %v1153_v20 = vpack.c.bf16 (!%p2010_p7), %v2800_v32, %v2797_v31 }
 0x38c   : > { %2144 = vmatpush3.bf16.msra.mxu0 (!%p2010_p7), %v2387_v34 }
 0x38d   : > { %2165 = vmatprep.subr.bf16.mxu0 (!%p2010_p7), %v2459_v19 }
 0x38f   : > { %2146 = vmatmul.mubr.msk.bf16.vlgmr.msra.gmra.mrb[0].mxu0 %vm464_vm0, %v2572_v3  ;;  %v2011_v3 = vld [vmem:[%s3006_s2] ss:$0 sm:$0xff] }
 0x390   : > { %2149 = vmatprep.mubr.msk.bf16.mxu0 %vm464_vm0, %v2576_v4  ;;  %2166 = vmatpush3.bf16.msra.mxu0 %v2460_v2 }
 0x391   : > { %2167 = vmatprep.subr.bf16.mxu0 %v2459_v19 }
 0x394   : > { %2168 = vmatpush3.bf16.msra.mxu0 %v2460_v2 }
 0x395   : > { %2169 = vmatprep.subr.bf16.mxu0 %v2459_v19 }
 0x397   : > { %2150 = vmatmul.mubr.msk.bf16.gmra.mrb[4].mxu0 %vm464_vm0, %v2582_v5 }
 0x398   : > { %2170 = vmatpush3.bf16.msra.mxu0 %v2460_v2  ;;  %2173 = vmatprep.mubr.msk.bf16.mxu0 %vm2461_vm3, %v2459_v19 }
 0x399   : > { %2171 = vmatprep.subr.bf16.mxu0 %v2459_v19 }
 0x39c   : > { %2172 = vmatpush3.bf16.msra.mxu0 %v2460_v2 }
 0x39d   : > { %2189 = vmatprep.subr.bf16.mxu0 %v2459_v19 }
 0x462   : > { %v2147_v36 = vpop.f32.mrb[0].mxu0 }
 0x463   : > { %v996_v37 = vpop.f32.mrb[1].mxu0  ;;  %v1005_v5 = vadd.f32 %v2147_v36, %v2011_v3 }
 0x464   : > { %v2148_v4 = vpop.f32.mrb[2].mxu0  ;;  %v997_v40 = vadd.f32 %v2011_v3, %v996_v37 }
 0x465   : > { %v1008_v39 = vadd.f32 %v2148_v4, %v2011_v3  ;;  %v999_v35 = vpop.f32.mrb[3].mxu0  ;;  %v1154_v4 = vld [vmem:[#allocation2 + $0x10] sm:$0xff] }
 0x466   : > { %v1000_v42 = vadd.f32 %v2011_v3, %v999_v35 }
 0x467   : > { %v1032_v38 = vpack.c.bf16 %v1008_v39, %v1005_v5  ;;  %v1236_v5 = vld [vmem:[#allocation3 + $0x10] sm:$0xff] }
 0x468   : > { %v1031_v41 = vpack.c.bf16 %v1000_v42, %v997_v40  ;;  %v1155_v40 = vld [vmem:[#allocation2 + $0x18] sm:$0xff] }
 0x469   : > { %1178 = vrot.lane.b32.xlu0 %v1032_v38, %s2462_s22  ;;  %v1237_v42 = vld [vmem:[#allocation3 + $0x18] sm:$0xff] }
 0x46a   : > { %v2151_v45 = vpop.f32.mrb[4].mxu0  ;;  %2154 = vmatpush3.bf16.msra.mxu1 %v1031_v41 }
 0x46b   : > { %v1021_v47 = vadd.f32 %v2151_v45, %v2011_v3  ;;  %v1012_v43 = vpop.f32.mrb[5].mxu0  ;;  %2155 = vmatprep.subr.bf16.mxu1 %v2459_v19 }
 0x46c   : > { %v1013_v46 = vadd.f32 %v2011_v3, %v1012_v43  ;;  %v2152_v49 = vpop.f32.mrb[6].mxu0 }
 0x46d   : > { %v1024_v53 = vadd.f32 %v2152_v49, %v2011_v3  ;;  %v1015_v54 = vpop.f32.mrb[7].mxu0  ;;  %1176 = vrot.lane.b32.xlu0 %v1031_v41, %s2462_s22 }
 0x46e   : > { %v1016_v57 = vadd.f32 %v2011_v3, %v1015_v54  ;;  %2156 = vmatpush3.bf16.msra.mxu1 %v1032_v38 }
 0x46f   : > { %v1034_v61 = vpack.c.bf16 %v1024_v53, %v1021_v47  ;;  %2157 = vmatprep.subr.bf16.mxu1 %v2459_v19 }
 0x470   : > { %v1033_v1 = vpack.c.bf16 %v1016_v57, %v1013_v46 }
 0x471   : > { %1182 = vrot.lane.b32.xlu1 %v1034_v61, %s2462_s22 }
 0x472   : > { %2158 = vmatpush3.bf16.msra.mxu1 %v1033_v1 }
 0x473   : > { %2159 = vmatprep.subr.bf16.mxu1 %v2459_v19 }
 0x475   : > { %1180 = vrot.lane.b32.xlu1 %v1033_v1, %s2462_s22 }
 0x476   : > { %2160 = vmatpush3.bf16.msra.mxu1 %v1034_v61 }
 0x477   : > { %2177 = vmatprep.subr.bf16.mxu1 %v2459_v19 }
 0x48b   : > { %1037 = vxpose.xlu0.c.b16.start [1/4] (short) (narrow) %v1027_v6, 16 }
 0x48f   : > { %1038 = vxpose.xlu0.c.b16.cont [2/4] (short) (narrow) %v1028_v44, 16 }
 0x493   : > { %1039 = vxpose.xlu0.c.b16.cont [3/4] (short) (narrow) %v1029_v10, 16 }
 0x497   : > { %1040 = vxpose.xlu0.c.b16.end [4/4] (short) (narrow) %v1030_v11, 16 }
 0x498   : > { %1156 = vxpose.xlu1.c.b16.start [1/4] (short) (narrow) %v1150_v14, 16 }
 0x49c   : > { %1157 = vxpose.xlu1.c.b16.cont [2/4] (short) (narrow) %v1151_v18, 16 }
 0x4a0   : > { %1158 = vxpose.xlu1.c.b16.cont [3/4] (short) (narrow) %v1152_v52, 16 }
 0x4a4   : > { %1159 = vxpose.xlu1.c.b16.end [4/4] (short) (narrow) %v1153_v20, 16 }
 0x4db   : > { %v1179_v21 = vpop.permute.xlu0 %1178 }
 0x4df   : > { %v1177_v22 = vpop.permute.xlu0 %1176 }
 0x4e3   : > { %v1183_v55 = vpop.permute.xlu1 %1182 }
 0x4e7   : > { %v1181_v23 = vpop.permute.xlu1 %1180 }
 0x4f1   : > { %v1045_v56 = vpop.trf.xlu0 }
 0x4f2   : > { %2162 = vmatmul.mubr.msk.bf16.vlgmr.msra.gmra.mrb[0].mxu1 %vm1053_vm4, %v1045_v56  ;;  %2174 = vmatmul.mubr.msk.bf16.vlgmr.msra.gmra.mrb[8].mxu0 %vm1053_vm4, %v1045_v56 }
 0x4f3   : > { %2178 = vmatpush3.bf16.msra.mxu1 %v1177_v22  ;;  %2190 = vmatpush3.bf16.msra.mxu0 %v2460_v2 }
 0x4f4   : > { %2179 = vmatprep.subr.bf16.mxu1 %v2459_v19  ;;  %2191 = vmatprep.subr.bf16.mxu0 %v2459_v19 }
 0x4f5   : > { %2185 = vmatprep.mubr.msk.bf16.mxu1 %vm2461_vm3, %v2459_v19  ;;  %2197 = vmatprep.mubr.msk.bf16.mxu0 %vm2461_vm3, %v2459_v19 }
 0x4f7   : > { %2180 = vmatpush3.bf16.msra.mxu1 %v1179_v21  ;;  %2192 = vmatpush3.bf16.msra.mxu0 %v2460_v2 }
 0x4f8   : > { %2181 = vmatprep.subr.bf16.mxu1 %v2459_v19  ;;  %2193 = vmatprep.subr.bf16.mxu0 %v2459_v19 }
 0x4fb   : > { %2182 = vmatpush3.bf16.msra.mxu1 %v1181_v23  ;;  %2194 = vmatpush3.bf16.msra.mxu0 %v2460_v2 }
 0x4fc   : > { %2183 = vmatprep.subr.bf16.mxu1 %v2459_v19  ;;  %2195 = vmatprep.subr.bf16.mxu0 %v2459_v19 }
 0x4fe   : > { %v1164_v59 = vpop.trf.xlu1 }
 0x4ff   : > { %2184 = vmatpush3.bf16.msra.mxu1 %v1183_v55  ;;  %2196 = vmatpush3.bf16.msra.mxu0 %v2460_v2 }
 0x502   : > { %2186 = vmatmul.mubr.msk.bf16.vlgmr.msra.gmra.mrb[4].mxu1 %vm1053_vm4, %v1164_v59  ;;  %2198 = vmatmul.mubr.msk.bf16.vlgmr.msra.gmra.mrb[12].mxu0 %vm1053_vm4, %v1164_v59 }
 0x5c5   : > { %v1091_v0 = vpop.f32.mrb[0].mxu1  ;;  %v1138_v27 = vpop.f32.mrb[8].mxu0 }
 0x5c6   : > { %v1098_v13 = vadd.f32 %v1091_v0, %v1035_v60  ;;  %v1145_v17 = vadd.f32 %v1138_v27, %v1102_v25  ;;  %v2163_v33 = vpop.f32.mrb[1].mxu1  ;;  %v2175_v16 = vpop.f32.mrb[9].mxu0 }
 0x5c7   : > { %v1094_v34 = vpop.f32.mrb[2].mxu1  ;;  %v1141_v19 = vpop.f32.mrb[10].mxu0 }
 0x5c8   : > { %1100 = vst.msk [vmem:[#allocation2] sm:$0xff] %vm561_vm1, %v1098_v13  ;;  %v1099_v2 = vadd.f32 %v1094_v34, %v1036_v29  ;;  %v1146_v36 = vadd.f32 %v1141_v19, %v1103_v7  ;;  %v2164_v3 = vpop.f32.mrb[3].mxu1  ;;  %v2176_v37 = vpop.f32.mrb[11].mxu0 }
 0x5c9   : > { %1148 = vst.msk [vmem:[#allocation3] sm:$0xff] %vm1147_vm5, %v1145_v17 }
 0x5ca   : > { %1101 = vst.msk [vmem:[#allocation2 + $0x8] sm:$0xff] %vm561_vm1, %v1099_v2 }
 0x5cb   : > { %1149 = vst.msk [vmem:[#allocation3 + $0x8] sm:$0xff] %vm1147_vm5, %v1146_v36 }
 0x5d5   : > { %v1225_v39 = vpop.f32.mrb[4].mxu1  ;;  %v1272_v35 = vpop.f32.mrb[12].mxu0 }
 0x5d6   : > { %v1232_v38 = vadd.f32 %v1225_v39, %v1154_v4  ;;  %v1279_v41 = vadd.f32 %v1272_v35, %v1236_v5  ;;  %v2187_v45 = vpop.f32.mrb[5].mxu1  ;;  %v2199_v47 = vpop.f32.mrb[13].mxu0 }
 0x5d7   : > { %v1228_v43 = vpop.f32.mrb[6].mxu1  ;;  %v1275_v46 = vpop.f32.mrb[14].mxu0 }
 0x5d8   : > { %1234 = vst.msk [vmem:[#allocation2 + $0x10] sm:$0xff] %vm561_vm1, %v1232_v38  ;;  %v1233_v49 = vadd.f32 %v1228_v43, %v1155_v40  ;;  %v1280_v53 = vadd.f32 %v1275_v46, %v1237_v42  ;;  %v2188_v54 = vpop.f32.mrb[7].mxu1  ;;  %v2200_v57 = vpop.f32.mrb[15].mxu0 }
 0x5d9   : > { %1281 = vst.msk [vmem:[#allocation3 + $0x10] sm:$0xff] %vm1147_vm5, %v1279_v41 }
 0x5da   : > { %1235 = vst.msk [vmem:[#allocation2 + $0x18] sm:$0xff] %vm561_vm1, %v1233_v49 }
 0x5db   : > { %1282 = vst.msk [vmem:[#allocation3 + $0x18] sm:$0xff] %vm1147_vm5, %v1280_v53 }
 0x5dc PF: > { %p1283_p8 = scmp.eq.s32.totalorder %s2439_s13, 1 }
 0x5dd   : > { %v1288_v1 = vld [vmem:[#allocation3] sm:$0xff] (%p1283_p8)  ;;  %v2463_v44 = vmov (%p1283_p8), 0   ;;  %v1289_v18 = vld [vmem:[#allocation3 + $0x8] sm:$0xff] (%p1283_p8)  ;;  %v2464_v2 = vmov (%p1283_p8), 0.0   ;;  %vm2465_vm6 = vmmov (%p1283_p8), 0   ;;  %s2466_s25 = smov (%p1283_p8), 112  }
 0x5de   : > { %1287 = sbr.rel (!%p1283_p8) target bundleno = 3499 (0xdab), region = 72  ;;  %2389 = vset.pattern.permute.xlu1 (%p1283_p8), %v2463_v44  ;;  %2388 = vset.pattern.permute.xlu0 (%p1283_p8), %v2463_v44  ;;  %v1292_v11 = vadd.f32 (%p1283_p8), 1e-05, %v1288_v1  ;;  %v1293_v52 = vadd.f32 (%p1283_p8), 1e-05, %v1289_v18  ;;  %v2390_v55 = vld [vmem:[%s3011_s7] sm:$0xff] (%p1283_p8)  }
 0x5df   : > { %2201 = vmatprep.subr.bf16.mxu0 (%p1283_p8), %v2390_v55  ;;  %v1302_v60 = vld [vmem:[#allocation2 + $0x10] sm:$0xff] (%p1283_p8)  ;;  %v1300_v0 = vld [vmem:[#allocation2] sm:$0xff] (%p1283_p8)  ;;  %v1301_v27 = vld [vmem:[#allocation2 + $0x8] sm:$0xff] (%p1283_p8)  ;;  %2207 = vmatprep.subr.bf16.mxu1 (%p1283_p8), %v2464_v2  ;;  %s2467_s26 = smov (%p1283_p8), 96  }
 0x5e0   : > { %v1290_v61 = vld [vmem:[#allocation3 + $0x10] sm:$0xff] (%p1283_p8)  ;;  %2202 = vmatpush3.bf16.msra.mxu0 (%p1283_p8), %v2390_v55  ;;  %2209 = vmatprep.mubr.msk.bf16.mxu1 (%p1283_p8), %vm2465_vm6, %v2464_v2 }
 0x5e1   : > { %v1294_v10 = vadd.f32 (%p1283_p8), 1e-05, %v1290_v61  ;;  %v1303_v25 = vld [vmem:[#allocation2 + $0x18] sm:$0xff] (%p1283_p8)  ;;  %2213 = vmatprep.subr.bf16.mxu0 (%p1283_p8), %v2464_v2 }
 0x5e2   : > { %v1291_v6 = vld [vmem:[#allocation3 + $0x18] sm:$0xff] (%p1283_p8) }
 0x5e3   : > { %v1295_v14 = vadd.f32 (%p1283_p8), 1e-05, %v1291_v6  ;;  %2393 = vrcp.f32 (%p1283_p8), %v1294_v10 }
 0x5e4   : > { %2395 = vrcp.f32 (%p1283_p8), %v1292_v11 }
 0x5e5   : > { %2397 = vrcp.f32 %v1295_v14 }
 0x5e6   : > { %2399 = vrcp.f32 %v1293_v52 }
 0x5ed   : > { %v2394_v20 = vpop.eup %2393 }
 0x5ee   : > { %v2396_v21 = vpop.eup %2395  ;;  %1316 = vperm.xlu1 %2389, %v2394_v20  }
 0x5ef   : > { %v2398_v22 = vpop.eup %2397  ;;  %1306 = vperm.xlu0 %2388, %v2396_v21  }
 0x5f0   : > { %v2400_v56 = vpop.eup %2399 }
 0x5f2   : > { %1321 = vperm.xlu1 %2389, %v2398_v22  }
 0x5f3   : > { %1311 = vperm.xlu0 %2388, %v2400_v56  }
 0x66d   : > { %v1317_v23 = vpop.permute.xlu1 %1316 }
 0x66e   : > { %v1307_v59 = vpop.permute.xlu0 %1306  ;;  %v1326_v7 = vmul.f32 %v1317_v23, %v1302_v60 }
 0x66f   : > { %v1324_v33 = vmul.f32 %v1307_v59, %v1300_v0 }
 0x671   : > { %v1322_v29 = vpop.permute.xlu1 %1321 }
 0x672   : > { %v1327_v13 = vmul.f32 %v1322_v29, %v1303_v25  ;;  %v1312_v17 = vpop.permute.xlu0 %1311  ;;  %v2391_v25 = vld [vmem:[%s3012_s8] sm:$0xff]  }
 0x673   : > { %v1325_v16 = vmul.f32 %v1312_v17, %v1301_v27 }
 0x674   : > { %v1329_v34 = vpack.c.bf16 %v1327_v13, %v1326_v7 }
 0x675   : > { %v1328_v19 = vpack.c.bf16 %v1325_v16, %v1324_v33 }
 0x677   : > { %2203 = vmatprep.mubr.msk.bf16.mxu0 %vm561_vm1, %v1328_v19 }
 0x678   : > { %2204 = vmatmul.mubr.msk.bf16.vlgmr.msra.gmra.mrb[0].mxu0 %vm561_vm1, %v1329_v34 }
 0x679   : > { %2215 = vmatprep.mubr.msk.bf16.mxu0 %vm2465_vm6, %v2464_v2 }
 0x74b   : > { %v2205_v36 = vpop.f32.mrb[0].mxu0 }
 0x74c   : > { %v1378_v3 = vpop.f32.mrb[1].mxu0 }
 0x74d   : > { %v2206_v37 = vpop.f32.mrb[2].mxu0 }
 0x74e   : > { %v2898_v4 = vpack.c.bf16 %v2206_v37, %v2205_v36  ;;  %v1381_v5 = vpop.f32.mrb[3].mxu0 }
 0x74f   : > { %v1397_v39 = vpack.c.bf16 %v1381_v5, %v1378_v3 }
 0x751   : > { %1399 = vrot.lane.b32.xlu0 %v1397_v39, %s2466_s25 }
 0x7c3   : > { %v1400_v35 = vpop.permute.xlu0 %1399 }
 0x7c4   : > { %v1405_v40 = vsel %vm561_vm1, %v1400_v35, 0 }
 0x7c5   : > { %2208 = vmatpush3.bf16.xpose.msra.mxu1 %v1405_v40 }
 0x7c6   : > { %2219 = vmatprep.subr.bf16.mxu1 %v2464_v2 }
 0x7cc   : > { %2210 = vmatmul.mubr.msk.bf16.vlgmr.msra.gmra.mrb[0].mxu1 %vm561_vm1, %v1397_v39 }
 0x7cd   : > { %2221 = vmatprep.mubr.msk.bf16.mxu1 %vm2465_vm6, %v2464_v2  ;;  %2220 = vmatpush3.bf16.msra.mxu1 %v2391_v25 }
 0x7ce   : > { %2231 = vmatprep.subr.bf16.mxu1 %v2464_v2 }
 0x89f   : > { %v1441_v42 = vpop.f32.mrb[0].mxu1 }
 0x8a0   : > { %v1448_v38 = vmul.f32 0.25, %v1441_v42  ;;  %v2211_v41 = vpop.f32.mrb[1].mxu1 }
 0x8a1   : > { %v1444_v45 = vpop.f32.mrb[2].mxu1 }
 0x8a2   : > { %v1449_v47 = vmul.f32 0.25, %v1444_v45  ;;  %v2212_v43 = vpop.f32.mrb[3].mxu1  ;;  %v1450_v46 = vsel %vm561_vm1, %v1448_v38, -inf }
 0x8a3   : > { %1451 = vmax.xlane.f32.xlu1 %v1450_v46  ;;  %v2392_v43 = vld [vmem:[%s3012_s8 + $0x8] sm:$0xff]  }
 0x8a4   : > { %v1453_v49 = vsel %vm561_vm1, %v1449_v47, -inf }
 0x8a5   : > { %1454 = vmax.xlane.f32.xlu0 %v1453_v49 }
 0x930   : > { %v1452_v53 = vpop.xlane.xlu1 %1451 }
 0x931   : > { %v1456_v54 = vsub.f32 %v1448_v38, %v1452_v53 }
 0x932   : > { %v1455_v57 = vpop.xlane.xlu0 %1454 }
 0x933   : > { %v1458_v61 = vmul.f32 1.442695, %v1456_v54  ;;  %v1457_v1 = vsub.f32 %v1449_v47, %v1455_v57 }
 0x935   : > { %2401 = vpow2.f32 %v1458_v61  ;;  %v1460_v6 = vmul.f32 1.442695, %v1457_v1 }
 0x937   : > { %2403 = vpow2.f32 %v1460_v6 }
 0x93f   : > { %v2402_v44 = vpop.eup %2401 }
 0x940   : > { %v1462_v10 = vsel %vm561_vm1, %v2402_v44, 0.0 }
 0x941   : > { %v2404_v11 = vpop.eup %2403  ;;  %1463 = vadd.xlane.f32.xlu0 %v1462_v10 }
 0x942   : > { %v1465_v14 = vsel %vm561_vm1, %v2404_v11, 0.0 }
 0x943   : > { %1466 = vadd.xlane.f32.xlu1 %v1465_v14 }
 0x954   : > { %1575 = vrot.lane.b32.xlu1 %v2898_v4, %s2466_s25 }
 0x957   : > { %1473 = vrot.lane.b32.xlu0 %v1397_v39, %s2467_s26 }
 0x9ce   : > { %v1464_v18 = vpop.xlane.xlu0 %1463 }
 0x9cf   : > { %2405 = vrcp.f32 %v1464_v18 }
 0x9d0   : > { %v1467_v52 = vpop.xlane.xlu1 %1466 }
 0x9d1   : > { %2407 = vrcp.f32 %v1467_v52 }
 0x9d2   : > { %v1474_v20 = vpop.permute.xlu0 %1473 }
 0x9d3   : > { %2214 = vmatpush3.bf16.msra.mxu0 %v1474_v20 }
 0x9d4   : > { %2225 = vmatprep.subr.bf16.mxu0 %v2464_v2  ;;  %v1576_v23 = vpop.permute.xlu1 %1575 }
 0x9d5   : > { %v1581_v60 = vsel %vm561_vm1, %v1576_v23, 0 }
 0x9d9   : > { %v2406_v21 = vpop.eup %2405 }
 0x9da   : > { %v1470_v56 = vmul.f32 %v2406_v21, %v2402_v44 }
 0x9db   : > { %v2408_v22 = vpop.eup %2407 }
 0x9dc   : > { %v1471_v55 = vmul.f32 %v2408_v22, %v2404_v11 }
 0x9de   : > { %v1472_v59 = vpack.c.bf16 %v1471_v55, %v1470_v56 }
 0x9e0   : > { %2216 = vmatmul.mubr.msk.bf16.vlgmr.msra.gmra.mrb[4].mxu0 %vm561_vm1, %v1472_v59 }
 0x9e1   : > { %2226 = vmatpush3.bf16.xpose.msra.mxu0 %v1581_v60  ;;  %2227 = vmatprep.mubr.msk.bf16.mxu0 %vm2465_vm6, %v2464_v2 }
 0x9e2   : > { %2237 = vmatprep.subr.bf16.mxu0 %v2464_v2 }
 0x9e8   : > { %2228 = vmatmul.mubr.msk.bf16.vlgmr.msra.gmra.mrb[8].mxu0 %vm561_vm1, %v2898_v4 }
 0x9e9   : > { %2239 = vmatprep.mubr.msk.bf16.mxu0 %vm2465_vm6, %v2464_v2  ;;  %2238 = vmatpush3.bf16.msra.mxu0 %v2392_v43 }
 0xab3   : > { %v1513_v0 = vpop.f32.mrb[4].mxu0 }
 0xab4   : > { %v2217_v27 = vpop.f32.mrb[5].mxu0 }
 0xab5   : > { %v1516_v29 = vpop.f32.mrb[6].mxu0 }
 0xab6   : > { %v1520_v7 = vpack.c.bf16 %v1516_v29, %v1513_v0  ;;  %v2218_v13 = vpop.f32.mrb[7].mxu0 }
 0xab8   : > { %2222 = vmatmul.mubr.msk.bf16.vlgmr.msra.gmra.mrb[4].mxu1 %vm561_vm1, %v1520_v7 }
 0xab9   : > { %2233 = vmatprep.mubr.msk.bf16.mxu1 %vm2465_vm6, %v2464_v2 }
 0xabb   : > { %v1617_v17 = vpop.f32.mrb[8].mxu0 }
 0xabc   : > { %v1624_v33 = vmul.f32 0.25, %v1617_v17  ;;  %v2229_v16 = vpop.f32.mrb[9].mxu0 }
 0xabd   : > { %v1620_v34 = vpop.f32.mrb[10].mxu0 }
 0xabe   : > { %v1625_v19 = vmul.f32 0.25, %v1620_v34  ;;  %v2230_v36 = vpop.f32.mrb[11].mxu0  ;;  %v1626_v3 = vsel %vm561_vm1, %v1624_v33, -inf }
 0xabf   : > { %1627 = vmax.xlane.f32.xlu1 %v1626_v3 }
 0xac0   : > { %v1629_v37 = vsel %vm561_vm1, %v1625_v19, -inf }
 0xac1   : > { %1630 = vmax.xlane.f32.xlu0 %v1629_v37 }
 0xb4c   : > { %v1628_v5 = vpop.xlane.xlu1 %1627 }
 0xb4d   : > { %v1632_v39 = vsub.f32 %v1624_v33, %v1628_v5 }
 0xb4e   : > { %v1631_v35 = vpop.xlane.xlu0 %1630 }
 0xb4f   : > { %v1634_v40 = vmul.f32 1.442695, %v1632_v39  ;;  %v1633_v42 = vsub.f32 %v1625_v19, %v1631_v35 }
 0xb51   : > { %2409 = vpow2.f32 %v1634_v40  ;;  %v1636_v38 = vmul.f32 1.442695, %v1633_v42 }
 0xb53   : > { %2411 = vpow2.f32 %v1636_v38 }
 0xb5b   : > { %v2410_v2 = vpop.eup %2409 }
 0xb5c   : > { %v1638_v41 = vsel %vm561_vm1, %v2410_v2, 0.0 }
 0xb5d   : > { %v2412_v45 = vpop.eup %2411  ;;  %1639 = vadd.xlane.f32.xlu0 %v1638_v41 }
 0xb5e   : > { %v1641_v47 = vsel %vm561_vm1, %v2412_v45, 0.0 }
 0xb5f   : > { %1642 = vadd.xlane.f32.xlu1 %v1641_v47 }
 0xb73   : > { %1649 = vrot.lane.b32.xlu0 %v2898_v4, %s2467_s26 }
 0xb8b   : > { %v1564_v46 = vpop.f32.mrb[4].mxu1 }
 0xb8c   : > { %1571 = vst.msk [vmem:[#allocation4] sm:$0xff] %vm464_vm0, %v1564_v46  ;;  %v2223_v49 = vpop.f32.mrb[5].mxu1 }
 0xb8d   : > { %v1567_v53 = vpop.f32.mrb[6].mxu1 }
 0xb8e   : > { %1572 = vst.msk [vmem:[#allocation4 + $0x8] sm:$0xff] %vm464_vm0, %v1567_v53  ;;  %v2224_v54 = vpop.f32.mrb[7].mxu1 }
 0xbea   : > { %v1640_v57 = vpop.xlane.xlu0 %1639 }
 0xbeb   : > { %2413 = vrcp.f32 %v1640_v57 }
 0xbec   : > { %v1643_v61 = vpop.xlane.xlu1 %1642 }
 0xbed   : > { %2415 = vrcp.f32 %v1643_v61 }
 0xbee   : > { %v1650_v1 = vpop.permute.xlu0 %1649 }
 0xbef   : > { %2232 = vmatpush3.bf16.msra.mxu1 %v1650_v1 }
 0xbf5   : > { %v2414_v4 = vpop.eup %2413 }
 0xbf6   : > { %v1646_v44 = vmul.f32 %v2414_v4, %v2410_v2 }
 0xbf7   : > { %v2416_v6 = vpop.eup %2415 }
 0xbf8   : > { %v1647_v10 = vmul.f32 %v2416_v6, %v2412_v45 }
 0xbfa   : > { %v1648_v11 = vpack.c.bf16 %v1647_v10, %v1646_v44 }
 0xbfc   : > { %2234 = vmatmul.mubr.msk.bf16.vlgmr.msra.gmra.mrb[8].mxu1 %vm561_vm1, %v1648_v11 }
 0xccf   : > { %v1689_v14 = vpop.f32.mrb[8].mxu1 }
 0xcd0   : > { %v2235_v18 = vpop.f32.mrb[9].mxu1 }
 0xcd1   : > { %v1692_v52 = vpop.f32.mrb[10].mxu1 }
 0xcd2   : > { %v1696_v20 = vpack.c.bf16 %v1692_v52, %v1689_v14  ;;  %v2236_v21 = vpop.f32.mrb[11].mxu1 }
 0xcd4   : > { %2240 = vmatmul.mubr.msk.bf16.vlgmr.msra.gmra.mrb[12].mxu0 %vm561_vm1, %v1696_v20 }
 0xda7   : > { %v1740_v22 = vpop.f32.mrb[12].mxu0 }
 0xda8   : > { %1747 = vst.msk [vmem:[#allocation4 + $0x10] sm:$0xff] %vm464_vm0, %v1740_v22  ;;  %v2241_v56 = vpop.f32.mrb[13].mxu0 }
 0xda9   : > { %v1743_v55 = vpop.f32.mrb[14].mxu0 }
 0xdaa   : > { %1748 = vst.msk [vmem:[#allocation4 + $0x18] sm:$0xff] %vm464_vm0, %v1743_v55  ;;  %v2242_v23 = vpop.f32.mrb[15].mxu0 }
 0xdab PF: > { %p2034_p9 = scmp.ne.s32.totalorder %s2439_s13, 1 }
 0xdac   : > { %v1756_v59 = vpack.c.bf16 (!%p2034_p9), %v2788_v63, %v2785_v26  ;;  %v1757_v60 = vpack.c.bf16 (!%p2034_p9), %v2782_v62, %v2779_v24  ;;  %v1784_v25 = vld [vmem:[#allocation4] sm:$0xff] (!%p2034_p9)  ;;  %v1785_v0 = vld [vmem:[#allocation4 + $0x8] sm:$0xff] (!%p2034_p9)  ;;  %s2468_s12 = smov (!%p2034_p9), 16   ;;  %v1758_v13 = vpack.c.bf16 (!%p2034_p9), %v2794_v30, %v2791_v28  ;;  %v1759_v17 = vpack.c.bf16 (!%p2034_p9), %v2800_v32, %v2797_v31 }
 0xdad   : > { %1751 = sbr.rel (%p2034_p9) target bundleno = 3841 (0xf01), region = 76  ;;  %v1788_v29 = vpack.c.bf16 (!%p2034_p9), %v1785_v0, %v1784_v25  ;;  %v1753_v24 = vpack.c.bf16 (!%p2034_p9), %v2764_v9, %v2754_v50  ;;  %v1752_v62 = vpack.c.bf16 (!%p2034_p9), %v2770_v48, %v2757_v58  ;;  %v1755_v31 = vpack.c.bf16 (!%p2034_p9), %v2773_v15, %v2761_v8  ;;  %v2035_v8 = vld [vmem:[%s3013_s9] ss:$0 sm:$0xff] (!%p2034_p9) }
 0xdae   : > { %1764 = vrot.lane.b32.xlu0 (!%p2034_p9), %v1756_v59, %s2468_s12  ;;  %1766 = vrot.lane.b32.xlu1 (!%p2034_p9), %v1757_v60, %s2468_s12  ;;  %v1754_v32 = vpack.c.bf16 (!%p2034_p9), %v2776_v51, %v2767_v12 }
 0xdaf   : > { %v1786_v27 = vld [vmem:[#allocation4 + $0x10] sm:$0xff] (!%p2034_p9)  ;;  %2243 = vmatprep.subr.bf16.mxu0 (!%p2034_p9), %v1788_v29  ;;  %2257 = vmatprep.subr.bf16.mxu1 (!%p2034_p9), %v1788_v29 }
 0xdb0   : > { %2244 = vmatpush3.bf16.msra.mxu0 (!%p2034_p9), %v1788_v29  ;;  %2259 = vmatpush3.bf16.msra.mxu1 (!%p2034_p9), %v1788_v29 }
 0xdb1   : > { %v1787_v7 = vld [vmem:[#allocation4 + $0x18] sm:$0xff] (!%p2034_p9) }
 0xdb2   : > { %v1789_v33 = vpack.c.bf16 (!%p2034_p9), %v1787_v7, %v1786_v27  ;;  %1768 = vrot.lane.b32.xlu0 (!%p2034_p9), %v1758_v13, %s2468_s12  ;;  %1770 = vrot.lane.b32.xlu1 (!%p2034_p9), %v1759_v17, %s2468_s12 }
 0xdb4   : > { %2245 = vmatprep.subr.bf16.mxu0 %v1789_v33  ;;  %2258 = vmatprep.subr.bf16.mxu1 %v1789_v33 }
 0xdb5   : > { %2246 = vmatpush3.bf16.msra.mxu0 %v1789_v33  ;;  %2260 = vmatpush3.bf16.msra.mxu1 %v1789_v33 }
 0xe20   : > { %v1765_v26 = vpop.permute.xlu0 %1764  ;;  %v1767_v63 = vpop.permute.xlu1 %1766 }
 0xe21   : > { %v1777_v28 = vsel %vm561_vm1, %v1753_v24, %v1767_v63  ;;  %v1774_v30 = vsel %vm561_vm1, %v1752_v62, %v1765_v26 }
 0xe22   : > { %2247 = vmatprep.mubr.msk.bf16.mxu0 %vm464_vm0, %v1774_v30 }
 0xe23   : > { %2248 = vmatmul.mubr.msk.bf16.vlgmr.msra.gmra.mrb[0].mxu0 %vm464_vm0, %v1777_v28 }
 0xe24   : > { %v1769_v50 = vpop.permute.xlu0 %1768  ;;  %v1771_v58 = vpop.permute.xlu1 %1770 }
 0xe25   : > { %v1783_v9 = vsel %vm561_vm1, %v1755_v31, %v1771_v58  ;;  %v1780_v48 = vsel %vm561_vm1, %v1754_v32, %v1769_v50 }
 0xe26   : > { %2251 = vmatprep.mubr.msk.bf16.mxu1 %vm464_vm0, %v1780_v48 }
 0xe27   : > { %2252 = vmatmul.mubr.msk.bf16.vlgmr.msra.gmra.mrb[0].mxu1 %vm464_vm0, %v1783_v9 }
 0xef6   : > { %v2249_v12 = vpop.f32.mrb[0].mxu0 }
 0xef7   : > { %v1848_v15 = vadd.f32 %v2249_v12, %v2035_v8  ;;  %v1839_v51 = vpop.f32.mrb[1].mxu0 }
 0xef8   : > { %v1840_v16 = vadd.f32 %v2035_v8, %v1839_v51  ;;  %v2250_v34 = vpop.f32.mrb[2].mxu0 }
 0xef9   : > { %1872 = vst.msk [vmem:[%s2568_s11 + $0x10] sm:$0xff] %vm464_vm0, %v1848_v15  ;;  %v1851_v19 = vadd.f32 %v2250_v34, %v2035_v8  ;;  %v1842_v36 = vpop.f32.mrb[3].mxu0 }
 0xefa   : > { %1870 = vst.msk [vmem:[%s2568_s11] sm:$0xff] %vm464_vm0, %v1840_v16  ;;  %v1843_v3 = vadd.f32 %v2035_v8, %v1842_v36  ;;  %v2253_v37 = vpop.f32.mrb[0].mxu1 }
 0xefb   : > { %1873 = vst.msk [vmem:[%s2568_s11 + $0x18] sm:$0xff] %vm464_vm0, %v1851_v19  ;;  %v1864_v5 = vadd.f32 %v2253_v37, %v2035_v8  ;;  %v1855_v39 = vpop.f32.mrb[1].mxu1 }
 0xefc   : > { %1871 = vst.msk [vmem:[%s2568_s11 + $0x8] sm:$0xff] %vm464_vm0, %v1843_v3  ;;  %v1856_v35 = vadd.f32 %v2035_v8, %v1855_v39  ;;  %v2254_v40 = vpop.f32.mrb[2].mxu1 }
 0xefd   : > { %1876 = vst.msk [vmem:[%s2568_s11 + $0x30] sm:$0xff] %vm464_vm0, %v1864_v5  ;;  %v1867_v42 = vadd.f32 %v2254_v40, %v2035_v8  ;;  %v1858_v38 = vpop.f32.mrb[3].mxu1 }
 0xefe   : > { %1874 = vst.msk [vmem:[%s2568_s11 + $0x20] sm:$0xff] %vm464_vm0, %v1856_v35  ;;  %v1859_v2 = vadd.f32 %v2035_v8, %v1858_v38 }
 0xeff   : > { %1877 = vst.msk [vmem:[%s2568_s11 + $0x38] sm:$0xff] %vm464_vm0, %v1867_v42 }
 0xf00   : > { %1875 = vst.msk [vmem:[%s2568_s11 + $0x28] sm:$0xff] %vm464_vm0, %v1859_v2 }
 0xf01 PF: > { %s20_s17 = sadd.s32 1, %s2455_s17   ;;  %s3015_s13 = smov %s2447_s15 }
 0xf02   : > { %p17_p10 = scmp.ge.s32.totalorder %s20_s17, 6   ;;  %s3016_s14 = smov %s2451_s16 }
 0xf03   : > { %s3017_s15 = smov %s3020_s18  ;;  %s3018_s16 = smov %s3024_s19 }
 0xf04   :  { %19 = sbr.rel (!%p17_p10) target bundleno = 3 (0x3), region = 108 }

</bundles_post_ra>
